<compile_context>
chip_gen: v7x
topology: tpu7x:2x2x1
jax: 0.10.0
libtpu: 0.0.40
codegen_flags: <defaults>
</compile_context>

<pallas_src>
import jax
import jax.numpy as jnp
from jax import lax
from jax.experimental import pallas as pl
from jax.experimental.pallas import tpu as pltpu

VIRTUAL_ATOM_FEATURE_PLACEHOLDER = -1  # constant used in PerioGT


def atom_embedding_kernel(x_ref, g_ref, w2_ref, addv_ref, addn_ref, o_ref):
    # x_ref   : (TN, 2*d_atom)   pair slots packed along lanes (free reshape)
    # g_ref   : (TN, 1) int8     1 -> virtual atom row, 0 -> real atom row
    # w2_ref  : (2*d_atom, d_g)  [W^T ; W^T] stacked along K
    # addv_ref: (1, d_g) f32     virt_emb + b   (virtual rows)
    # addn_ref: (1, d_g) f32     2 * b          (normal rows)
    # o_ref   : (TN, d_g)        sum over the pair dimension
    tn, two_d = x_ref.shape
    d_atom = two_d // 2

    is_virtual = g_ref[...].astype(jnp.int32) != 0                      # (TN, 1)

    # Zero slot-1 lanes of virtual rows so their slot-1 projection vanishes;
    # the 2*d_atom-lane block stays intact (no mid-vreg slicing, full-K matmul).
    lane = lax.broadcasted_iota(jnp.int32, (tn, two_d), 1)
    keep = jnp.logical_or(lane < d_atom, jnp.logical_not(is_virtual))   # (TN, 2*d_atom)
    x_masked = jnp.where(keep, x_ref[...], jnp.zeros((), x_ref.dtype))

    h = jnp.dot(x_masked, w2_ref[...], preferred_element_type=jnp.float32)  # (TN, d_g)

    # Bias counted twice unless slot 1 was replaced by the virtual embedding.
    add = jnp.where(is_virtual, addv_ref[...], addn_ref[...])           # (TN, d_g)

    # TODO(synk): nn.Dropout(input_drop) implemented as eval-mode identity.
    o_ref[...] = (h + add).astype(o_ref.dtype)


def _round_up(x, m):
    return ((x + m - 1) // m) * m


def atom_embedding(pair_node_feats, indicators, w, b, virt_emb, *, tile_n=2048):
    """pair_node_feats: [N, 2, d_atom] (f32 or bf16), indicators: [N] int.
    w: [d_g, d_atom] (PyTorch Linear layout), b: [d_g], virt_emb: [1, d_g].
    Returns [N, d_g] f32."""
    N, two, d_atom = pair_node_feats.shape
    assert two == 2
    d_g = w.shape[0]
    x_dtype = pair_node_feats.dtype

    # Layout-preserving reshape (contiguous): no extra HBM pass over the features.
    x2d = pair_node_feats.reshape(N, 2 * d_atom)
    # Per-row virtual-atom gate as int8 (tiny HBM array; 4x smaller VMEM block).
    gate = (indicators.reshape(N, 1) == VIRTUAL_ATOM_FEATURE_PLACEHOLDER).astype(jnp.int8)

    # Parameter prep (tiny; caller can hoist/cache these outside the hot path).
    w_t = jnp.asarray(w, jnp.float32).T                              # (d_atom, d_g)
    w2 = jnp.concatenate([w_t, w_t], axis=0).astype(x_dtype)         # (2*d_atom, d_g)
    b_f = jnp.asarray(b, jnp.float32).reshape(1, d_g)
    add_virt = jnp.asarray(virt_emb, jnp.float32).reshape(1, d_g) + b_f
    add_norm = 2.0 * b_f
    # NOTE: if production d_g were not a multiple of 128, pad W2/add_* columns here
    # (once) to keep the output block lane-dense; d_g=128 in the demo already is.

    # Big tiles amortize the ~0.35us/step pipeline overhead; keep >= 2 grid blocks
    # so both TensorCores get work on v7x. Ragged last block is masked by Pallas.
    tile_n = max(128, min(tile_n, _round_up(pl.cdiv(N, 2), 128)))
    n_blocks = pl.cdiv(N, tile_n)

    return pl.pallas_call(
        atom_embedding_kernel,
        out_shape=jax.ShapeDtypeStruct((N, d_g), jnp.float32),
        grid_spec=pltpu.PrefetchScalarGridSpec(
            num_scalar_prefetch=0,
            grid=(n_blocks,),
            in_specs=[
                pl.BlockSpec((tile_n, 2 * d_atom), lambda i: (i, 0)),
                pl.BlockSpec((tile_n, 1), lambda i: (i, 0)),
                pl.BlockSpec((2 * d_atom, d_g), lambda i: (0, 0)),
                pl.BlockSpec((1, d_g), lambda i: (0, 0)),
                pl.BlockSpec((1, d_g), lambda i: (0, 0)),
            ],
            out_specs=pl.BlockSpec((tile_n, d_g), lambda i: (i, 0)),
        ),
        compiler_params=pltpu.CompilerParams(
            dimension_semantics=("parallel",),
            vmem_limit_bytes=32 * 1024 * 1024),
    )(x2d, gate, w2, add_virt, add_norm)


def atom_embedding_ref(pair_node_feats, indicators, w, b, virt_emb):
    h = jnp.einsum("npd,gd->npg", pair_node_feats.astype(jnp.float32),
                   jnp.asarray(w, jnp.float32)) + jnp.asarray(b, jnp.float32)
    mask = (indicators == VIRTUAL_ATOM_FEATURE_PLACEHOLDER)[:, None]
    h1 = jnp.where(mask, jnp.asarray(virt_emb, jnp.float32).reshape(1, -1), h[:, 1, :])
    return h[:, 0, :] + h1


if __name__ == "__main__":
    key = jax.random.PRNGKey(0)
    k1, k2, k3, k4, k5 = jax.random.split(key, 5)

    # Small but representative shapes; N deliberately not a multiple of tile_n to
    # exercise the ragged last block, d_g lane-dense (128).
    N, d_atom_feats, d_g_feats = 1000, 64, 128

    pair_node_feats = jax.random.normal(k1, (N, 2, d_atom_feats), jnp.float32)
    # roughly half of the entries are virtual atoms
    indicators = jnp.where(
        jax.random.bernoulli(k2, 0.5, (N,)),
        jnp.int32(VIRTUAL_ATOM_FEATURE_PLACEHOLDER),
        jnp.int32(0),
    )

    # deterministic parameter init (synthetic; not a checkpoint)
    w = jax.random.normal(k3, (d_g_feats, d_atom_feats), jnp.float32) * 0.1
    b = jax.random.normal(k4, (d_g_feats,), jnp.float32) * 0.1
    virt_emb = jax.random.normal(k5, (1, d_g_feats), jnp.float32)

    out = atom_embedding(pair_node_feats, indicators, w, b, virt_emb)
    out = jax.block_until_ready(out)

    ref = atom_embedding_ref(pair_node_feats, indicators, w, b, virt_emb)
    assert out.shape == (N, d_g_feats)
    assert jnp.allclose(out, ref, atol=1e-4, rtol=1e-5), float(
        jnp.max(jnp.abs(out - ref)))

    print("KERNEL_OK")
</pallas_src>

<mosaic_0001>
module attributes {stable_mosaic.version = 11 : i64} {
  func.func @atom_embedding_kernel(%arg0: i32, %arg1: memref<512x128xf32, #tpu.memory_space<vmem>>, %arg2: memref<512x1xi8, #tpu.memory_space<vmem>>, %arg3: memref<128x128xf32, #tpu.memory_space<vmem>>, %arg4: memref<1x128xf32, #tpu.memory_space<vmem>>, %arg5: memref<1x128xf32, #tpu.memory_space<vmem>>, %arg6: memref<512x128xf32, #tpu.memory_space<vmem>>) attributes {dimension_semantics = [#tpu.dimension_semantics<parallel>], iteration_bounds = array<i64: 2>, scalar_prefetch = 0 : i64, scratch_operands = 0 : i64, tpu.core_type = #tpu.core_type<tc>, window_params = [{transform_indices = @transform_0, window_bounds = array<i64: 512, 128>}, {transform_indices = @transform_1, window_bounds = array<i64: 512, 1>}, {pipeline_mode = #tpu.pipeline_mode<synchronous>, transform_indices = @transform_2, window_bounds = array<i64: 128, 128>}, {pipeline_mode = #tpu.pipeline_mode<synchronous>, transform_indices = @transform_3, window_bounds = array<i64: 1, 128>}, {pipeline_mode = #tpu.pipeline_mode<synchronous>, transform_indices = @transform_4, window_bounds = array<i64: 1, 128>}, {transform_indices = @transform_5, window_bounds = array<i64: 512, 128>}]} {
    %c0 = arith.constant 0 : index
    %c0_0 = arith.constant 0 : index
    %0 = vector.load %arg2[%c0, %c0_0] : memref<512x1xi8, #tpu.memory_space<vmem>>, vector<512x1xi8>
    %1 = arith.extsi %0 : vector<512x1xi8> to vector<512x1xi32>
    %c0_i32 = arith.constant 0 : i32
    %2 = vector.broadcast %c0_i32 : i32 to vector<512x1xi32>
    %3 = arith.cmpi ne, %1, %2 : vector<512x1xi32>
    %4 = tpu.iota {dimensions = array<i32: 1>} : vector<512x128xi32>
    %c64_i32 = arith.constant 64 : i32
    %5 = vector.broadcast %c64_i32 : i32 to vector<512x128xi32>
    %6 = arith.cmpi slt, %4, %5 : vector<512x128xi32>
    %cst = arith.constant dense<true> : vector<512x1xi1>
    %7 = arith.xori %3, %cst : vector<512x1xi1>
    %8 = vector.broadcast %7 : vector<512x1xi1> to vector<512x128xi1>
    %9 = arith.ori %6, %8 : vector<512x128xi1>
    %c0_1 = arith.constant 0 : index
    %c0_2 = arith.constant 0 : index
    %10 = vector.load %arg1[%c0_1, %c0_2] : memref<512x128xf32, #tpu.memory_space<vmem>>, vector<512x128xf32>
    %cst_3 = arith.constant 0.000000e+00 : f32
    %11 = vector.broadcast %cst_3 : f32 to vector<512x128xf32>
    %12 = arith.select %9, %10, %11 : vector<512x128xi1>, vector<512x128xf32>
    %c0_4 = arith.constant 0 : index
    %c0_5 = arith.constant 0 : index
    %13 = vector.load %arg3[%c0_4, %c0_5] : memref<128x128xf32, #tpu.memory_space<vmem>>, vector<128x128xf32>
    %cst_6 = arith.constant dense<0.000000e+00> : vector<512x128xf32>
    %14 = tpu.matmul %12, %13, %cst_6 {dimension_numbers = #tpu.dot_dimension_numbers<[1], [0], [0], [1], [0, 0, 1, 1], [], []>} : vector<512x128xf32>, vector<128x128xf32>, vector<512x128xf32> -> vector<512x128xf32>
    %c0_7 = arith.constant 0 : index
    %c0_8 = arith.constant 0 : index
    %15 = vector.load %arg4[%c0_7, %c0_8] : memref<1x128xf32, #tpu.memory_space<vmem>>, vector<1x128xf32>
    %c0_9 = arith.constant 0 : index
    %c0_10 = arith.constant 0 : index
    %16 = vector.load %arg5[%c0_9, %c0_10] : memref<1x128xf32, #tpu.memory_space<vmem>>, vector<1x128xf32>
    %17 = vector.shape_cast %3 : vector<512x1xi1> to vector<512x1xi1>
    %18 = vector.broadcast %17 : vector<512x1xi1> to vector<512x128xi1>
    %19 = vector.shape_cast %15 : vector<1x128xf32> to vector<1x128xf32>
    %20 = vector.broadcast %19 : vector<1x128xf32> to vector<512x128xf32>
    %21 = vector.shape_cast %16 : vector<1x128xf32> to vector<1x128xf32>
    %22 = vector.broadcast %21 : vector<1x128xf32> to vector<512x128xf32>
    %23 = arith.select %18, %20, %22 : vector<512x128xi1>, vector<512x128xf32>
    %24 = arith.addf %14, %23 : vector<512x128xf32>
    %c0_11 = arith.constant 0 : index
    %c0_12 = arith.constant 0 : index
    %25 = vector.load %arg6[%c0_11, %c0_12] : memref<512x128xf32, #tpu.memory_space<vmem>>, vector<512x128xf32>
    tpu.vector_store %arg6[%c0_11, %c0_12], %24 {strides = array<i32>} : memref<512x128xf32, #tpu.memory_space<vmem>>, vector<512x128xf32>,
    return
  }
  func.func @transform_0(%arg0: i32) -> (i32, i32) {
    %c0_i32 = arith.constant 0 : i32
    %c0_i32_0 = arith.constant 0 : i32
    return %arg0, %c0_i32 : i32, i32
  }
  func.func @transform_1(%arg0: i32) -> (i32, i32) {
    %c0_i32 = arith.constant 0 : i32
    %c0_i32_0 = arith.constant 0 : i32
    return %arg0, %c0_i32 : i32, i32
  }
  func.func @transform_2(%arg0: i32) -> (i32, i32) {
    %c0_i32 = arith.constant 0 : i32
    %c0_i32_0 = arith.constant 0 : i32
    %c0_i32_1 = arith.constant 0 : i32
    return %c0_i32, %c0_i32_0 : i32, i32
  }
  func.func @transform_3(%arg0: i32) -> (i32, i32) {
    %c0_i32 = arith.constant 0 : i32
    %c0_i32_0 = arith.constant 0 : i32
    %c0_i32_1 = arith.constant 0 : i32
    return %c0_i32, %c0_i32_0 : i32, i32
  }
  func.func @transform_4(%arg0: i32) -> (i32, i32) {
    %c0_i32 = arith.constant 0 : i32
    %c0_i32_0 = arith.constant 0 : i32
    %c0_i32_1 = arith.constant 0 : i32
    return %c0_i32, %c0_i32_0 : i32, i32
  }
  func.func @transform_5(%arg0: i32) -> (i32, i32) {
    %c0_i32 = arith.constant 0 : i32
    %c0_i32_0 = arith.constant 0 : i32
    return %arg0, %c0_i32 : i32, i32
  }
}

</mosaic_0001>

<bundles_post_ra>
// kernel: tpu_custom_call.1
= control target key start
LH: loop header
LB: loop body
LE: loop exit
PB: predicated region body
PF: predicated region fallthrough
CT: control target
= control target key end

     0   :  { %10 = vsyncpa [#allocation3], 0  ;;  %s4550_s0 = inlined_call_operand.hbm [shape: f32[1000,128], index: 0, kind: input, shape index: {}]   ;;  %s4551_s1 = inlined_call_operand.vmem [shape: s8[1000,1], index: 1, kind: input, shape index: {}]   ;;  %s4552_s2 = inlined_call_operand.vmem [shape: f32[128,128], index: 2, kind: input, shape index: {}]   ;;  %s4553_s3 = inlined_call_operand.vmem [shape: f32[1,128], index: 3, kind: input, shape index: {}]   ;;  %s4554_s4 = inlined_call_operand.vmem [shape: f32[1,128], index: 4, kind: input, shape index: {}]   ;;  %s4555_s5 = inlined_call_operand.hbm [shape: f32[1000,128], index: 5, kind: output, shape index: {}]  }
   0x1   :  { %12 = vsyncpa [#allocation3 + $0x1], 0 }
   0x2   :  { %13 = vsyncpa [#allocation4], 0 }
   0x3   :  { %15 = vsyncpa [#allocation4 + $0x1], 0  ;;  %s2728_s18 = smov 0   ;;  %s2730_s19 = smov 0  }
   0x4   :  { %s2732_s20 = smov 0   ;;  %s2734_s21 = smov 0  }
   0x5 LB: > { %s2749_s22 = sadd.s32 4294967295, %s2688_s21   ;;  %s2040_s23 = sadd.s32 4294967294, %s2688_s21   ;;  %s2688_s21 = sphi %s2734_s21, %s5049_s21   ;;  %s2684_s20 = sphi %s2732_s20, %s5048_s20   ;;  %s2680_s19 = sphi %s2730_s19, %s5047_s19   ;;  %s2676_s18 = sphi %s2728_s18, %s5046_s18  }
   0x6   : > { %s2753_s24 = sadd.s32 1, %s2688_s21   ;;  %s28_s25 = sadd.s32 1, %s2684_s20 }
   0x7   : > { %s25_s26 = ssub.s32 %s2688_s21, %s2753_s24  ;;  %p35_p0 = scmp.ne.s32.totalorder %s2684_s20, %s2680_s19 }
   0x8   : > { %p26_p1 = scmp.eq.s32.totalorder %s25_s26, 0  ;;  %p36_p2 = scmp.eq.s32.totalorder %s2688_s21, 0 }
   0x9   : > { %p41_p3 = scmp.ne.s32.totalorder %s2680_s19, %s2676_s18  ;;  %p42_p4 = scmp.eq.s32.totalorder %s2749_s22, 0 }
   0xa   : > { %s2765_s27 = scalar_select %p26_p1, %s2684_s20, %s28_s25  }
   0xb   : > { %p37_p5 = por %p36_p2, %p35_p0  ;;  %p2767_p6 = por %p42_p4, %p41_p3 }
   0xc   : > { %p154_p7 = scmp.eq.s32.totalorder %s2749_s22, 1  ;;  %p160_p8 = scmp.eq.s32.totalorder %s2040_s23, 1 }
   0xd   : > { %p4556_p11 = scmp.ge.s32.totalorder %s2688_s21, 2 }
   0xe   : > { %p2772_p9 = por %p154_p7, %p35_p0  ;;  %p2776_p10 = por %p160_p8, %p41_p3 }
   0xf   : > { %185 = sbr.rel (%p4556_p11) target bundleno = 57 (0x39), region = 28 }
  0x10   : > { %s4660_s30 = scalar_select %p2776_p10, 1, 0 }
  0x16   : > { %188 = sbr.rel (!%p37_p5) target bundleno = 57 (0x39), region = 32  ;;  %s189_s6 = sand.u32 (%p37_p5), 1, %s2684_s20  }
  0x17   : > { %s2044_s7 = sshll.u32 (%p37_p5), %s2688_s21, 6  ;;  %s2043_s8 = sshll.u32 (%p37_p5), %s189_s6, 9 }
  0x18   : > { %s195_s9 = ssub.s32 (%p37_p5), 125, %s2044_s7  ;;  %s2788_s12 = scalar_lea.sflag (%p37_p5), [#allocation3], %s189_s6 }
  0x19   : > { %p196_p12 = scmp.lt.s32.totalorder (%p37_p5), %s195_s9, 64  ;;  %s193_s13 = scalar_lea.vmem (%p37_p5), [#allocation2], %s2043_s8 }
  0x1d   : > { %s5051_s9 = smov (!%p196_p12, %s195_s9), 64 }
  0x1e   : > { %s2785_s10 = sshll.u32 %s5051_s9, 7 }
  0x1f   : > { %s200_s11 = ssub.s32 8192, %s2785_s10 }
  0x20   : > { %201 = vsyncadd %s2788_s12, %s200_s11  ;;  %p2046_p13 = scmp.ne.s32.totalorder %s2785_s10, 0  ;;  %s2130_s14 = sshll.u32 %s2688_s21, 13 }
  0x21   : > { %s2796_s17 = scalar_lea.hbm %s4550_s0, %s2130_s14  ;;  %s206_s23 = sshll.u32 %s193_s13, 4  ;;  %s2798_s23 = int_to_ptr.vmem [resolvable:$true] %s206_s23 }
  0x22   : > { %s2594_s25 = scalar_lea.hbm %s2796_s17, %s2785_s10  ;;  %s2598_s7 = scalar_lea.hbm %s4550_s0, 16000 }
  0x23   : > { %p2595_p0 = scmp.ne.s32.totalorder %s2796_s17, %s2594_s25  ;;  %p2599_p3 = scmp.lt.u32.totalorder %s2796_s17, %s4550_s0 }
  0x24   : > { %p2600_p4 = scmp.lt.u32.totalorder %s2598_s7, %s2594_s25  ;;  %p2602_p7 = scmp.lt.u32.totalorder %s2594_s25, %s2796_s17 }
  0x25   : > { %p2596_p1 = pnand %p2595_p0, %p2046_p13 }
  0x26   : > { %p2601_p5 = por %p2600_p4, %p2599_p3 }
  0x27   : > { %p2597_p2 = pneg %p2596_p1 }
  0x28   : > { %p2603_p8 = por %p2602_p7, %p2601_p5 }
  0x2a   : > { %p2604_p12 = pnand %p2603_p8, %p2597_p2 }
  0x2c   : > { %2607 = shalt.err (!%p2604_p12)
}
  0x2d   : > { %s2608_s11 = scalar_lea.vmem %s2798_s23, %s2785_s10  ;;  %s2690_s13 = smov [#allocation2]  }
  0x2e   : > { %p2609_p0 = scmp.ne.s32.totalorder %s2798_s23, %s2608_s11  ;;  %s2612_s14 = sshll.u32 %s2690_s13, 4  ;;  %s2613_s14 = int_to_ptr.vmem [resolvable:$false] %s2612_s14 }
  0x2f   : > { %s2614_s15 = scalar_lea.vmem %s2613_s14, 16384  ;;  %p2615_p10 = scmp.lt.s32.totalorder %s2798_s23, %s2613_s14 }
  0x30   : > { %p2610_p1 = pnand %p2609_p0, %p2046_p13  ;;  %p2616_p3 = scmp.lt.s32.totalorder %s2614_s15, %s2608_s11 }
  0x32   : > { %p2611_p11 = pneg %p2610_p1  ;;  %p2617_p4 = por %p2616_p3, %p2615_p10 }
  0x34   : > { %p2618_p5 = pnand %p2617_p4, %p2611_p11 }
  0x36   : > { %2621 = shalt.err (!%p2618_p5)
}
  0x37   : > { %s2691_s16 = smov 128   ;;  %s2692_s25 = smov 8  }
  0x38   : > { %212 = dma.hbm_to_vmem [thread:$0]  (%p2046_p13), %s2796_s17, %s2785_s10, %s2798_s23, %s2788_s12, %s2691_s16, %s2691_s16, %s2692_s25  }
  0x39 PF: > { %p2050_p2 = scmp.ge.s32.totalorder %s2688_s21, 1  ;;  %p231_p7 = scmp.lt.s32.totalorder %s2688_s21, 3 }
  0x3b   : > { %p232_p8 = pnand %p2050_p2, %p231_p7 }
  0x3d   : > { %235 = sbr.rel (%p232_p8) target bundleno = 597 (0x255), region = 40 }
  0x44   : > { %s2828_s26 = sand.u32 1, %s2680_s19  }
  0x45   : > { %s2051_s6 = sshll.u32 %s2828_s26, 9  ;;  %s238_s7 = scalar_lea.sflag [#allocation3], %s2828_s26 }
  0x46   : > { %s2834_s8 = scalar_lea.vmem [#allocation2], %s2051_s6 }
  0x47   : > { %2667 = dma.done.wait (%p2767_p6), %s238_s7, 8192  }
  0x48   : > { %2669 = vsyncadd (%p2767_p6), %s238_s7, 4294959104  ;;  %s2841_s10 = sshll.u32 %s2749_s22, 6  ;;  %v4586_v0 = vmov 0   ;;  %v4661_v10 = vmov 0  ;;  %v4663_v11 = vmov 0  ;;  %v4665_v12 = vmov 0 }
  0x49   : > { %2593 = vset.pattern.permute.xlu1 %v4586_v0  ;;  %2592 = vset.pattern.permute.xlu0 %v4586_v0  ;;  %p287_p10 = scmp.lt.s32.totalorder %s2841_s10, 124  ;;  %vm2694_vm3 = vmmov 1   ;;  %v4667_v13 = vmov 0  ;;  %v4669_v15 = vmov 0  ;;  %v4671_v18 = vmov 0  ;;  %s4212_s13 = scalar_lea.vmem [#allocation5], %s2051_s6 }
  0x4a   : > { %v4673_v22 = vmov 0  ;;  %v4675_v24 = vmov 0  ;;  %v4677_v29 = vmov 0  ;;  %v4679_v31 = vmov 0  ;;  %s1936_s6 = scalar_lea.sflag [#allocation4], %s2828_s26  ;;  %s1944_s14 = ssub.s32 (%p2772_p9), 125, %s2841_s10 }
  0x4b   : > { %s288_s12 = scalar_select %p287_p10, %s2841_s10, 124  ;;  %v4681_v35 = vmov 0  ;;  %v4683_v37 = vmov 0  ;;  %v4685_v42 = vmov 0  ;;  %v4687_v44 = vmov 0 }
  0x4c   : > { %v4689_v51 = vmov 0  ;;  %v4691_v53 = vmov 0  ;;  %v4693_v57 = vmov 0  ;;  %v4695_v60 = vmov 0  ;;  %p1945_p6 = scmp.lt.s32.totalorder (%p2772_p9), %s1944_s14, 64 }
  0x4d   : > { %s2054_s17 = sshll.u32 %s288_s12, 1 }
  0x4e   : > { %s2850_s11 = scalar_lea.vmem %s4551_s1, %s2054_s17 }
  0x4f   : > { %v2516_v1 = vld [vmem:[%s2850_s11 + $0x4] sm:$0xff]   ;;  %v2133_v2 = vld [vmem:[%s2850_s11] sm:$0xf]   ;;  %v2518_v9 = vld [vmem:[%s2850_s11 + $0xc] sm:$0xff]  }
  0x50   : > { %v2138_v3 = vunpack.c.0.s8 %v2516_v1  ;;  %v2134_v4 = vunpack.c.0.s8 %v2133_v2  ;;  %v2139_v5 = vunpack.c.1.s8 %v2516_v1  ;;  %v2135_v6 = vunpack.c.1.s8 %v2133_v2  ;;  %v2520_v26 = vld [vmem:[%s2850_s11 + $0x14] sm:$0xff]   ;;  %v2522_v39 = vld [vmem:[%s2850_s11 + $0x1c] sm:$0xff]   ;;  %v2524_v46 = vld [vmem:[%s2850_s11 + $0x24] sm:$0xff]  }
  0x51   : > { %v2143_v7 = vunpack.c.3.s8 %v2516_v1  ;;  %v2142_v8 = vunpack.c.2.s8 %v2516_v1  ;;  %v2147_v16 = vunpack.c.1.s8 %v2518_v9  ;;  %v2146_v19 = vunpack.c.0.s8 %v2518_v9  ;;  %v2977_v55 = vld [vmem:[%s2850_s11 + $0x2c] sm:$0xff]   ;;  %v2532_v62 = vld [vmem:[%s2850_s11 + $0x44] sm:$0xff]  }
  0x52   : > { %vm2855_vm0 = vcmp.ne.s32.totalorder %v2138_v3, 0  ;;  %vm2859_vm1 = vcmp.ne.s32.totalorder %v2134_v4, 0  ;;  %vm2863_vm2 = vcmp.ne.s32.totalorder %v2139_v5, 0  ;;  %vm2870_vm5 = vcmp.ne.s32.totalorder %v2135_v6, 0  ;;  %v1072_v6 = vld [vmem:[%s4552_s2] sm:$0xff] }
  0x53   : > { %v4662_v10 = vsel %vm2855_vm0, 4294967295, %v4661_v10  ;;  %v4664_v11 = vsel %vm2859_vm1, 4294967295, %v4663_v11  ;;  %v4666_v12 = vsel %vm2863_vm2, 4294967295, %v4665_v12  ;;  %vm498_vm4 = vmxor %vm2855_vm0, %vm2694_vm3  ;;  %v4668_v13 = vsel %vm2870_vm5, 4294967295, %v4667_v13 }
  0x54   : > { %v562_v14 = vsel %vm498_vm4, 1, %v4586_v0  ;;  %vm496_vm6 = vmxor %vm2859_vm1, %vm2694_vm3  ;;  %vm2878_vm7 = vcmp.ne.s32.totalorder %v2143_v7, 0  ;;  %vm2886_vm9 = vcmp.ne.s32.totalorder %v2142_v8, 0  ;;  %vm2901_vm13 = vcmp.ne.s32.totalorder %v2147_v16, 0  ;;  %v1073_v7 = vld [vmem:[%s4552_s2 + $0x8] sm:$0xff] }
  0x55   : > { %v4670_v15 = vsel %vm2878_vm7, 4294967295, %v4669_v15  ;;  %631 = vperm.xlu1 %2593, %v562_v14   ;;  %v560_v17 = vsel %vm496_vm6, 1, %v4586_v0  ;;  %vm499_vm8 = vmxor %vm2863_vm2, %vm2694_vm3  ;;  %v4672_v18 = vsel %vm2886_vm9, 4294967295, %v4671_v18  ;;  %v4674_v22 = vsel %vm2901_vm13, 4294967295, %v4673_v22 }
  0x56   : > { %625 = vperm.xlu0 %2592, %v560_v17   ;;  %v563_v20 = vsel %vm499_vm8, 1, %v4586_v0  ;;  %vm497_vm10 = vmxor %vm2870_vm5, %vm2694_vm3  ;;  %v2151_v23 = vunpack.c.3.s8 %v2518_v9  ;;  %vm2905_vm14 = vcmp.ne.s32.totalorder %v2146_v19, 0  ;;  %v2150_v25 = vunpack.c.2.s8 %v2518_v9  ;;  %v1074_v17 = vld [vmem:[%s4552_s2 + $0x10] sm:$0xff]  ;;  %v1075_v19 = vld [vmem:[%s4552_s2 + $0x18] sm:$0xff] }
  0x57   : > { %v561_v21 = vsel %vm497_vm10, 1, %v4586_v0  ;;  %vm501_vm11 = vmxor %vm2878_vm7, %vm2694_vm3  ;;  %v4676_v24 = vsel %vm2905_vm14, 4294967295, %v4675_v24  ;;  %v2155_v30 = vunpack.c.1.s8 %v2520_v26  ;;  %v2154_v32 = vunpack.c.0.s8 %v2520_v26  ;;  %v1078_v9 = vld [vmem:[%s4552_s2 + $0x30] sm:$0xff] }
  0x58   : > { %vm500_vm12 = vmxor %vm2886_vm9, %vm2694_vm3  ;;  %v565_v27 = vsel %vm501_vm11, 1, %v4586_v0  ;;  %vm2918_vm6 = vcmp.ne.s32.totalorder %v2151_v23, 0  ;;  %vm2922_vm8 = vcmp.ne.s32.totalorder %v2150_v25, 0  ;;  %v2159_v36 = vunpack.c.3.s8 %v2520_v26 }
  0x59   : > { %634 = vperm.xlu1 %2593, %v563_v20   ;;  %v564_v28 = vsel %vm500_vm12, 1, %v4586_v0  ;;  %vm503_vm15 = vmxor %vm2901_vm13, %vm2694_vm3  ;;  %v4678_v29 = vsel %vm2918_vm6, 4294967295, %v4677_v29  ;;  %v4680_v31 = vsel %vm2922_vm8, 4294967295, %v4679_v31  ;;  %vm2934_vm12 = vcmp.ne.s32.totalorder %v2155_v30, 0 }
  0x5a   : > { %628 = vperm.xlu0 %2592, %v561_v21   ;;  %vm502_vm4 = vmxor %vm2905_vm14, %vm2694_vm3  ;;  %v567_v33 = vsel %vm503_vm15, 1, %v4586_v0  ;;  %v4682_v35 = vsel %vm2934_vm12, 4294967295, %v4681_v35  ;;  %vm2938_vm14 = vcmp.ne.s32.totalorder %v2154_v32, 0  ;;  %v2158_v38 = vunpack.c.2.s8 %v2520_v26  ;;  %v3071_v32 = vld [vmem:[%s2850_s11 + $0x34] sm:$0xff]  }
  0x5b   : > { %v566_v34 = vsel %vm502_vm4, 1, %v4586_v0  ;;  %vm505_vm10 = vmxor %vm2918_vm6, %vm2694_vm3  ;;  %v4684_v37 = vsel %vm2938_vm14, 4294967295, %v4683_v37  ;;  %v2163_v43 = vunpack.c.1.s8 %v2522_v39  ;;  %v2162_v45 = vunpack.c.0.s8 %v2522_v39 }
  0x5c   : > { %vm504_vm11 = vmxor %vm2922_vm8, %vm2694_vm3  ;;  %v569_v40 = vsel %vm505_vm10, 1, %v4586_v0  ;;  %vm2951_vm8 = vcmp.ne.s32.totalorder %v2159_v36, 0  ;;  %vm2955_vm6 = vcmp.ne.s32.totalorder %v2158_v38, 0  ;;  %v2167_v48 = vunpack.c.3.s8 %v2522_v39 }
  0x5d   : > { %640 = vperm.xlu1 %2593, %v565_v27   ;;  %v568_v41 = vsel %vm504_vm11, 1, %v4586_v0  ;;  %vm507_vm15 = vmxor %vm2934_vm12, %vm2694_vm3  ;;  %v4686_v42 = vsel %vm2951_vm8, 4294967295, %v4685_v42  ;;  %v4688_v44 = vsel %vm2955_vm6, 4294967295, %v4687_v44  ;;  %v2166_v50 = vunpack.c.2.s8 %v2522_v39  ;;  %v3057_v27 = vld [vmem:[%s2850_s11 + $0x4c] sm:$0xff]  }
  0x5e   : > { %637 = vperm.xlu0 %2592, %v564_v28   ;;  %vm506_vm4 = vmxor %vm2938_vm14, %vm2694_vm3  ;;  %v571_v47 = vsel %vm507_vm15, 1, %v4586_v0  ;;  %vm2968_vm14 = vcmp.ne.s32.totalorder %v2163_v43, 0  ;;  %v2171_v52 = vunpack.c.1.s8 %v2524_v46  ;;  %vm2972_vm15 = vcmp.ne.s32.totalorder %v2162_v45, 0  ;;  %v1076_v43 = vld [vmem:[%s4552_s2 + $0x20] sm:$0xff]  ;;  %v1077_v45 = vld [vmem:[%s4552_s2 + $0x28] sm:$0xff] }
  0x5f   : > { %v570_v49 = vsel %vm506_vm4, 1, %v4586_v0  ;;  %vm509_vm10 = vmxor %vm2951_vm8, %vm2694_vm3  ;;  %v4690_v51 = vsel %vm2968_vm14, 4294967295, %v4689_v51  ;;  %v4692_v53 = vsel %vm2972_vm15, 4294967295, %v4691_v53  ;;  %v2170_v54 = vunpack.c.0.s8 %v2524_v46 }
  0x60   : > { %vm508_vm11 = vmxor %vm2955_vm6, %vm2694_vm3  ;;  %v573_v56 = vsel %vm509_vm10, 1, %v4586_v0  ;;  %vm2980_vm4 = vcmp.ne.s32.totalorder %v2167_v48, 0  ;;  %v2175_v58 = vunpack.c.3.s8 %v2524_v46  ;;  %vm2988_vm8 = vcmp.ne.s32.totalorder %v2166_v50, 0 }
  0x61   : > { %646 = vperm.xlu1 %2593, %v567_v33   ;;  %v4694_v57 = vsel %vm2980_vm4, 4294967295, %v4693_v57  ;;  %v572_v59 = vsel %vm508_vm11, 1, %v4586_v0  ;;  %vm511_vm6 = vmxor %vm2968_vm14, %vm2694_vm3  ;;  %v4696_v60 = vsel %vm2988_vm8, 4294967295, %v4695_v60  ;;  %v2174_v61 = vunpack.c.2.s8 %v2524_v46 }
  0x62   : > { %643 = vperm.xlu0 %2592, %v566_v34   ;;  %vm2996_vm10 = vmxor %vm2972_vm15, %vm2694_vm3  ;;  %vm3000_vm12 = vcmp.ne.s32.totalorder %v2171_v52, 0  ;;  %v4699_v1 = vmov 0  ;;  %v2179_v2 = vunpack.c.1.s8 %v2977_v55  ;;  %vm3012_vm14 = vcmp.ne.s32.totalorder %v2170_v54, 0 }
  0x63   : > { %v4700_v1 = vsel %vm3000_vm12, 4294967295, %v4699_v1  ;;  %vm3008_vm11 = vmxor %vm2980_vm4, %vm2694_vm3  ;;  %v4704_v4 = vmov 0  ;;  %v2178_v5 = vunpack.c.0.s8 %v2977_v55  ;;  %v575_v8 = vsel %vm511_vm6, 1, %v4586_v0 }
  0x64   : > { %4701 = vst [vmem:[#allocation8_spill] sm:$0xff] %v4700_v1  ;;  %v4705_v4 = vsel %vm3012_vm14, 4294967295, %v4704_v4  ;;  %vm3027_vm4 = vmxor %vm2988_vm8, %vm2694_vm3  ;;  %vm3031_vm15 = vcmp.ne.s32.totalorder %v2175_v58, 0  ;;  %v4709_v14 = vmov 0  ;;  %v2203_v16 = vunpack.c.1.s8 %v2532_v62  ;;  %v3126_v58 = vld [vmem:[%s2850_s11 + $0x54] sm:$0xff]  }
  0x65   : > { %652 = vperm.xlu1 %2593, %v569_v40   ;;  %4706 = vst [vmem:[#allocation9_spill] sm:$0xff] %v4705_v4  ;;  %v4710_v14 = vsel %vm3031_vm15, 4294967295, %v4709_v14  ;;  %v574_v20 = vsel %vm2996_vm10, 1, %v4586_v0  ;;  %vm3047_vm6 = vmxor %vm3000_vm12, %vm2694_vm3  ;;  %vm3051_vm8 = vcmp.ne.s32.totalorder %v2174_v61, 0  ;;  %v4714_v23 = vmov 0 }
  0x66   : > { %649 = vperm.xlu0 %2592, %v568_v41   ;;  %4711 = vst [vmem:[#allocation10_spill] sm:$0xff] %v4710_v14  ;;  %v4715_v23 = vsel %vm3051_vm8, 4294967295, %v4714_v23  ;;  %v2183_v25 = vunpack.c.3.s8 %v2977_v55  ;;  %v2202_v26 = vunpack.c.0.s8 %v2532_v62  ;;  %vm3062_vm10 = vmxor %vm3012_vm14, %vm2694_vm3  ;;  %vm3066_vm12 = vcmp.ne.s32.totalorder %v2179_v2, 0 }
  0x67   : > { %4716 = vst [vmem:[#allocation11_spill] sm:$0xff] %v4715_v23  ;;  %v4719_v30 = vmov 0  ;;  %v2207_v33 = vunpack.c.3.s8 %v2532_v62  ;;  %v2468_v34 = vpack.c.bf16 %v1073_v7, %v1072_v6  ;;  %vm3076_vm13 = vmxor %vm3031_vm15, %vm2694_vm3  ;;  %vm3080_vm14 = vcmp.ne.s32.totalorder %v2178_v5, 0 }
  0x68   : > { %v4720_v30 = vsel %vm3066_vm12, 4294967295, %v4719_v30  ;;  %v4724_v38 = vmov 0  ;;  %v2182_v39 = vunpack.c.2.s8 %v2977_v55  ;;  %v2206_v40 = vunpack.c.2.s8 %v2532_v62  ;;  %vm3097_vm15 = vmxor %vm3051_vm8, %vm2694_vm3 }
  0x69   : > { %658 = vperm.xlu1 %2593, %v571_v47   ;;  %4721 = vst [vmem:[#allocation12_spill] sm:$0xff] %v4720_v30  ;;  %v4725_v38 = vsel %vm3080_vm14, 4294967295, %v4724_v38  ;;  %v2472_v41 = vpack.c.bf16 %v1075_v19, %v1074_v17  ;;  %v577_v46 = vsel %vm3008_vm11, 1, %v4586_v0  ;;  %vm3101_vm9 = vcmp.ne.s32.totalorder %v2203_v16, 0  ;;  %2469 = vmatprep.subr.bf16.mxu0 %v2468_v34  ;;  %vm3112_vm11 = vmxor %vm3066_vm12, %vm2694_vm3  ;;  %v1079_v16 = vld [vmem:[%s4552_s2 + $0x38] sm:$0xff] }
  0x6a   : > { %655 = vperm.xlu0 %2592, %v570_v49   ;;  %4726 = vst [vmem:[#allocation13_spill] sm:$0xff] %v4725_v38  ;;  %v4729_v48 = vmov 0  ;;  %v2211_v49 = vunpack.c.1.s8 %v3057_v27  ;;  %v576_v50 = vsel %vm3027_vm4, 1, %v4586_v0  ;;  %vm3116_vm8 = vcmp.ne.s32.totalorder %v2183_v25, 0  ;;  %2471 = vmatpush3.bf16.msra.mxu0 %v2468_v34  ;;  %vm3131_vm4 = vmxor %vm3080_vm14, %vm2694_vm3 }
  0x6b   : > { %v4730_v48 = vsel %vm3101_vm9, 4294967295, %v4729_v48  ;;  %v4734_v54 = vmov 0  ;;  %vm3120_vm7 = vcmp.ne.s32.totalorder %v2202_v26, 0  ;;  %v4737_v55 = vmov 0  ;;  %2500 = vmatprep.subr.bf16.mxu1 %v2468_v34  ;;  %2473 = vmatprep.subr.bf16.mxu0 %v2472_v41  ;;  %vm3149_vm14 = vmxor %vm3101_vm9, %vm2694_vm3 }
  0x6c   : > { %4731 = vst [vmem:[#allocation14_spill] sm:$0xff] %v4730_v48  ;;  %v4735_v54 = vsel %vm3116_vm8, 4294967295, %v4734_v54  ;;  %v4738_v55 = vsel %vm3120_vm7, 4294967295, %v4737_v55  ;;  %v2187_v61 = vunpack.c.1.s8 %v3071_v32  ;;  %vm3136_vm12 = vcmp.ne.s32.totalorder %v2207_v33, 0  ;;  %2508 = vmatpush3.bf16.msra.mxu1 %v2468_v34  ;;  %vm3170_vm9 = vmxor %vm3120_vm7, %vm2694_vm3 }
  0x6d   : > { %664 = vperm.xlu1 %2593, %v573_v56   ;;  %4736 = vst [vmem:[#allocation15_spill] sm:$0xff] %v4735_v54  ;;  %4739 = vst [vmem:[#allocation16_spill] sm:$0xff] %v4738_v55  ;;  %v2210_v56 = vunpack.c.0.s8 %v3057_v27  ;;  %v4742_v62 = vmov 0  ;;  %v2215_v63 = vunpack.c.3.s8 %v3057_v27  ;;  %v2476_v2 = vpack.c.bf16 %v1077_v45, %v1076_v43  ;;  %2501 = vmatprep.subr.bf16.mxu1 %v2472_v41  ;;  %v3217_v45 = vld [vmem:[%s2850_s11 + $0x3c] sm:$0xff]  }
  0x6e   : > { %661 = vperm.xlu0 %2592, %v572_v59   ;;  %v4743_v62 = vsel %vm3136_vm12, 4294967295, %v4742_v62  ;;  %vm3141_vm0 = vcmp.ne.s32.totalorder %v2182_v39, 0  ;;  %v4745_v3 = vmov 0  ;;  %v2186_v5 = vunpack.c.0.s8 %v3071_v32  ;;  %vm3193_vm7 = vmxor %vm3136_vm12, %vm2694_vm3  ;;  %v3203_v39 = vld [vmem:[%s2850_s11 + $0x5c] sm:$0xff]   ;;  %2475 = vmatpush3.bf16.msra.mxu0 %v2472_v41 }
  0x6f   : > { %4744 = vst [vmem:[#allocation17_spill] sm:$0xff] %v4743_v62  ;;  %v4746_v3 = vsel %vm3141_vm0, 4294967295, %v4745_v3  ;;  %vm3153_vm2 = vcmp.ne.s32.totalorder %v2206_v40, 0  ;;  %v4750_v7 = vmov 0  ;;  %v579_v17 = vsel %vm3047_vm6, 1, %v4586_v0  ;;  %vm3185_vm6 = vmxor %vm3116_vm8, %vm2694_vm3  ;;  %2477 = vmatprep.subr.bf16.mxu0 %v2476_v2  ;;  %v3293_v62 = vld [vmem:[%s2850_s11 + $0x64] sm:$0xff]  }
  0x70   : > { %4747 = vst [vmem:[#allocation18_spill] sm:$0xff] %v4746_v3  ;;  %v4751_v7 = vsel %vm3153_vm2, 4294967295, %v4750_v7  ;;  %v4753_v19 = vmov 0  ;;  %vm3174_vm1 = vcmp.ne.s32.totalorder %v2211_v49, 0  ;;  %v2219_v25 = vunpack.c.1.s8 %v3126_v58  ;;  %vm3222_vm8 = vmxor %vm3153_vm2, %vm2694_vm3  ;;  %2509 = vmatpush3.bf16.msra.mxu1 %v2472_v41 }
  0x71   : > { %670 = vperm.xlu1 %2593, %v575_v8   ;;  %4752 = vst [vmem:[#allocation19_spill] sm:$0xff] %v4751_v7  ;;  %v2214_v8 = vunpack.c.2.s8 %v3057_v27  ;;  %v4754_v19 = vsel %vm3170_vm9, 4294967295, %v4753_v19  ;;  %v578_v26 = vsel %vm3062_vm10, 1, %v4586_v0  ;;  %v2191_v27 = vunpack.c.3.s8 %v3071_v32  ;;  %vm3208_vm10 = vmxor %vm3141_vm0, %vm2694_vm3  ;;  %2502 = vmatprep.subr.bf16.mxu1 %v2476_v2 }
  0x72   : > { %667 = vperm.xlu0 %2592, %v574_v20   ;;  %v4755_v20 = vmov 0  ;;  %v4760_v33 = vmov 0  ;;  %vm3197_vm5 = vcmp.ne.s32.totalorder %v2210_v56, 0  ;;  %v4762_v34 = vmov 0  ;;  %vm3239_vm2 = vmxor %vm3174_vm1, %vm2694_vm3  ;;  %2479 = vmatpush3.bf16.msra.mxu0 %v2476_v2 }
  0x73   : > { %v4756_v20 = vsel %vm3174_vm1, 4294967295, %v4755_v20  ;;  %v4761_v33 = vsel %vm3193_vm7, 4294967295, %v4760_v33  ;;  %v4763_v34 = vsel %vm3197_vm5, 4294967295, %v4762_v34  ;;  %v2218_v28 = vunpack.c.0.s8 %v3126_v58  ;;  %vm3260_vm1 = vmxor %vm3197_vm5, %vm2694_vm3 }
  0x74   : > { %4757 = vst [vmem:[#allocation20_spill] sm:$0xff] %v4756_v20  ;;  %4764 = vst [vmem:[#allocation21_spill] sm:$0xff] %v4763_v34  ;;  %vm3212_vm12 = vcmp.ne.s32.totalorder %v2187_v61, 0  ;;  %v4767_v43 = vmov 0  ;;  %vm3226_vm7 = vcmp.ne.s32.totalorder %v2215_v63, 0  ;;  %v4772_v49 = vmov 0  ;;  %2510 = vmatpush3.bf16.msra.mxu1 %v2476_v2 }
  0x75   : > { %676 = vperm.xlu1 %2593, %v577_v46   ;;  %v4768_v43 = vsel %vm3212_vm12, 4294967295, %v4767_v43  ;;  %v4770_v46 = vmov 0  ;;  %v4773_v49 = vsel %vm3226_vm7, 4294967295, %v4772_v49  ;;  %v2480_v56 = vpack.c.bf16 %v1079_v16, %v1078_v9  ;;  %vm3283_vm5 = vmxor %vm3226_vm7, %vm2694_vm3 }
  0x76   : > { %673 = vperm.xlu0 %2592, %v576_v50   ;;  %4769 = vst [vmem:[#allocation22_spill] sm:$0xff] %v4768_v43  ;;  %v4771_v46 = vsel %vm3222_vm8, 4294967295, %v4770_v46  ;;  %4774 = vst [vmem:[#allocation23_spill] sm:$0xff] %v4773_v49  ;;  %v2223_v50 = vunpack.c.3.s8 %v3126_v58  ;;  %vm3231_vm0 = vcmp.ne.s32.totalorder %v2186_v5, 0  ;;  %v4775_v61 = vmov 0  ;;  %v1080_v5 = vld [vmem:[%s4552_s2 + $0x40] sm:$0xff] }
  0x77   : > { %v4776_v61 = vsel %vm3231_vm0, 4294967295, %v4775_v61  ;;  %v2190_v0 = vunpack.c.2.s8 %v3071_v32  ;;  %v4778_v63 = vmov 0  ;;  %vm3243_vm8 = vcmp.ne.s32.totalorder %v2214_v8, 0  ;;  %v1081_v32 = vld [vmem:[%s4552_s2 + $0x48] sm:$0xff]  ;;  %2481 = vmatprep.subr.bf16.mxu0 %v2480_v56  ;;  %2503 = vmatprep.subr.bf16.mxu1 %v2480_v56 }
  0x78   : > { %4777 = vst [vmem:[#allocation24_spill] sm:$0xff] %v4776_v61  ;;  %v4779_v63 = vsel %vm3239_vm2, 4294967295, %v4778_v63  ;;  %v4780_v7 = vmov 0  ;;  %v2222_v41 = vunpack.c.2.s8 %v3126_v58  ;;  %v4783_v9 = vmov 0   ;;  %2483 = vmatpush3.bf16.msra.mxu0 %v2480_v56  ;;  %2511 = vmatpush3.bf16.msra.mxu1 %v2480_v56 }
  0x79   : > { %682 = vperm.xlu1 %2593, %v579_v17   ;;  %v4781_v7 = vsel %vm3243_vm8, 4294967295, %v4780_v7  ;;  %v581_v8 = vsel %vm3076_vm13, 1, %v4783_v9  ;;  %v4784_v16 = vmov 0  ;;  %vm3264_vm2 = vcmp.ne.s32.totalorder %v2219_v25, 0  ;;  %vm3275_vm13 = vmxor %vm3212_vm12, %vm2694_vm3 }
  0x7a   : > { %4782 = vst [vmem:[#allocation25_spill] sm:$0xff] %v4781_v7  ;;  %679 = vperm.xlu0 %2592, %v578_v26   ;;  %v4785_v16 = vsel %vm3260_vm1, 4294967295, %v4784_v16  ;;  %v4786_v58 = vmov 0  ;;  %v2227_v17 = vunpack.c.1.s8 %v3203_v39  ;;  %v580_v26 = vsel %vm3097_vm15, 1, %v4783_v9  ;;  %vm3298_vm15 = vmxor %vm3231_vm0, %vm2694_vm3 }
  0x7b   : > { %v4787_v58 = vsel %vm3264_vm2, 4294967295, %v4786_v58  ;;  %v2195_v34 = vunpack.c.1.s8 %v3217_v45  ;;  %v4791_v25 = vmov 0  ;;  %vm3287_vm1 = vcmp.ne.s32.totalorder %v2218_v28, 0  ;;  %vm3309_vm12 = vmxor %vm3243_vm8, %vm2694_vm3 }
  0x7c   : > { %4788 = vst [vmem:[#allocation26_spill] sm:$0xff] %v4787_v58  ;;  %v4792_v25 = vsel %vm3283_vm5, 4294967295, %v4791_v25  ;;  %v4793_v20 = vmov 0  ;;  %v2226_v47 = vunpack.c.0.s8 %v3203_v39  ;;  %vm3302_vm7 = vcmp.ne.s32.totalorder %v2191_v27, 0  ;;  %vm3326_vm8 = vmxor %vm3264_vm2, %vm2694_vm3 }
  0x7d   : > { %v4794_v20 = vsel %vm3287_vm1, 4294967295, %v4793_v20  ;;  %v4798_v49 = vmov 0  ;;  %v4801_v28 = vmov 0  ;;  %vm3313_vm5 = vcmp.ne.s32.totalorder %v2223_v50, 0  ;;  %688 = vperm.xlu1 %2593, %v581_v8   ;;  %vm3347_vm2 = vmxor %vm3287_vm1, %vm2694_vm3 }
  0x7e   : > { %4795 = vst [vmem:[#allocation27_spill] sm:$0xff] %v4794_v20  ;;  %v4799_v49 = vsel %vm3302_vm7, 4294967295, %v4798_v49  ;;  %v4802_v28 = vsel %vm3309_vm12, 4294967295, %v4801_v28  ;;  %v4803_v48 = vmov 0  ;;  %v2231_v61 = vunpack.c.3.s8 %v3203_v39  ;;  %685 = vperm.xlu0 %2592, %v580_v26  }
  0x7f   : > { %4800 = vst [vmem:[#allocation28_spill] sm:$0xff] %v4799_v49  ;;  %v4804_v48 = vsel %vm3313_vm5, 4294967295, %v4803_v48  ;;  %v2484_v43 = vpack.c.bf16 %v1081_v32, %v1080_v5  ;;  %vm3318_vm0 = vcmp.ne.s32.totalorder %v2190_v0, 0  ;;  %v4806_v27 = vmov 0  ;;  %v1082_v0 = vld [vmem:[%s4552_s2 + $0x50] sm:$0xff]  ;;  %v1083_v5 = vld [vmem:[%s4552_s2 + $0x58] sm:$0xff] }
  0x80   : > { %4805 = vst [vmem:[#allocation29_spill] sm:$0xff] %v4804_v48  ;;  %v4807_v27 = vsel %vm3318_vm0, 4294967295, %v4806_v27  ;;  %v2194_v7 = vunpack.c.0.s8 %v3217_v45  ;;  %v4809_v50 = vmov 0  ;;  %vm3330_vm12 = vcmp.ne.s32.totalorder %v2222_v41, 0  ;;  %v3383_v49 = vld [vmem:[%s2850_s11 + $0x6c] sm:$0xff]  }
  0x81   : > { %4808 = vst [vmem:[#allocation30_spill] sm:$0xff] %v4807_v27  ;;  %v4810_v50 = vsel %vm3326_vm8, 4294967295, %v4809_v50  ;;  %v4811_v3 = vmov 0  ;;  %v2230_v2 = vunpack.c.2.s8 %v3203_v39  ;;  %v583_v41 = vsel %vm3112_vm11, 1, %v4783_v9  ;;  %vm3362_vm11 = vmxor %vm3302_vm7, %vm2694_vm3  ;;  %2485 = vmatprep.subr.bf16.mxu0 %v2484_v43  ;;  %2504 = vmatprep.subr.bf16.mxu1 %v2484_v43 }
  0x82   : > { %v4812_v3 = vsel %vm3330_vm12, 4294967295, %v4811_v3  ;;  %v4814_v32 = vmov 0  ;;  %vm3351_vm8 = vcmp.ne.s32.totalorder %v2227_v17, 0  ;;  %v4816_v39 = vmov 0  ;;  %694 = vperm.xlu1 %2593, %v583_v41   ;;  %2487 = vmatpush3.bf16.msra.mxu0 %v2484_v43 }
  0x83   : > { %4813 = vst [vmem:[#allocation31_spill] sm:$0xff] %v4812_v3  ;;  %v4815_v32 = vsel %vm3347_vm2, 4294967295, %v4814_v32  ;;  %v4817_v39 = vsel %vm3351_vm8, 4294967295, %v4816_v39  ;;  %v2235_v8 = vunpack.c.1.s8 %v3293_v62  ;;  %v582_v26 = vsel %vm3131_vm4, 1, %v4783_v9  ;;  %vm3373_vm2 = vmxor %vm3313_vm5, %vm2694_vm3  ;;  %2512 = vmatpush3.bf16.msra.mxu1 %v2484_v43  ;;  %v1087_v43 = vld [vmem:[%s4552_s2 + $0x78] sm:$0xff] }
  0x84   : > { %4818 = vst [vmem:[#allocation32_spill] sm:$0xff] %v4817_v39  ;;  %vm3366_vm1 = vcmp.ne.s32.totalorder %v2195_v34, 0  ;;  %v4821_v20 = vmov 0  ;;  %vm3377_vm9 = vcmp.ne.s32.totalorder %v2226_v47, 0  ;;  %v4826_v59 = vmov 0  ;;  %vm3388_vm4 = vmxor %vm3318_vm0, %vm2694_vm3  ;;  %691 = vperm.xlu0 %2592, %v582_v26   ;;  %v1005_v34 = vld [vmem:[%s2834_s8 + $0x1e8] sm:$0xff] }
  0x85   : > { %v4822_v20 = vsel %vm3366_vm1, 4294967295, %v4821_v20  ;;  %v4827_v59 = vsel %vm3377_vm9, 4294967295, %v4826_v59  ;;  %v2234_v58 = vunpack.c.0.s8 %v3293_v62  ;;  %v2199_v48 = vunpack.c.3.s8 %v3217_v45  ;;  %vm3396_vm5 = vmxor %vm3330_vm12, %vm2694_vm3 }
  0x86   : > { %4823 = vst [vmem:[#allocation33_spill] sm:$0xff] %v4822_v20  ;;  %4828 = vst [vmem:[#allocation34_spill] sm:$0xff] %v4827_v59  ;;  %v4831_v47 = vmov 0  ;;  %vm3400_vm7 = vcmp.ne.s32.totalorder %v2231_v61, 0  ;;  %v4833_v54 = vmov 0  ;;  %v2239_v38 = vunpack.c.3.s8 %v3293_v62  ;;  %v2544_v59 = vld [vmem:[%s2850_s11 + $0x74] sm:$0xff]  }
  0x87   : > { %v4832_v47 = vsel %vm3396_vm5, 4294967295, %v4831_v47  ;;  %v4834_v54 = vsel %vm3400_vm7, 4294967295, %v4833_v54  ;;  %v2488_v27 = vpack.c.bf16 %v1083_v5, %v1082_v0  ;;  %vm3405_vm0 = vcmp.ne.s32.totalorder %v2194_v7, 0  ;;  %vm3413_vm12 = vmxor %vm3351_vm8, %vm2694_vm3  ;;  %v1084_v7 = vld [vmem:[%s4552_s2 + $0x60] sm:$0xff] }
  0x88   : > { %4835 = vst [vmem:[#allocation35_spill] sm:$0xff] %v4834_v54  ;;  %v4836_v30 = vmov 0  ;;  %v2198_v3 = vunpack.c.2.s8 %v3217_v45  ;;  %v4839_v61 = vmov 0  ;;  %vm3417_vm5 = vcmp.ne.s32.totalorder %v2230_v2, 0  ;;  %v1085_v45 = vld [vmem:[%s4552_s2 + $0x68] sm:$0xff]  ;;  %vm3434_vm8 = vmxor %vm3377_vm9, %vm2694_vm3 }
  0x89   : > { %v4837_v30 = vsel %vm3405_vm0, 4294967295, %v4836_v30  ;;  %v4840_v61 = vsel %vm3413_vm12, 4294967295, %v4839_v61  ;;  %v4841_v23 = vmov 0  ;;  %v2238_v56 = vunpack.c.2.s8 %v3293_v62  ;;  %vm3456_vm9 = vmxor %vm3400_vm7, %vm2694_vm3  ;;  %2489 = vmatprep.subr.bf16.mxu0 %v2488_v27  ;;  %2505 = vmatprep.subr.bf16.mxu1 %v2488_v27 }
  0x8a   : > { %4838 = vst [vmem:[#allocation36_spill] sm:$0xff] %v4837_v30  ;;  %v4842_v23 = vsel %vm3417_vm5, 4294967295, %v4841_v23  ;;  %v585_v0 = vsel %vm3185_vm6, 1, %v4783_v9  ;;  %v4844_v2 = vmov 0  ;;  %vm3438_vm12 = vcmp.ne.s32.totalorder %v2235_v8, 0  ;;  %vm3449_vm6 = vmxor %vm3366_vm1, %vm2694_vm3  ;;  %2491 = vmatpush3.bf16.msra.mxu0 %v2488_v27  ;;  %2513 = vmatpush3.bf16.msra.mxu1 %v2488_v27 }
  0x8b   : > { %4843 = vst [vmem:[#allocation37_spill] sm:$0xff] %v4842_v23  ;;  %v4845_v2 = vsel %vm3434_vm8, 4294967295, %v4844_v2  ;;  %v4846_v62 = vmov 0  ;;  %v2243_v5 = vunpack.c.1.s8 %v3383_v49  ;;  %v584_v41 = vsel %vm3208_vm10, 1, %v4783_v9  ;;  %vm3469_vm10 = vmxor %vm3405_vm0, %vm2694_vm3  ;;  %700 = vperm.xlu1 %2593, %v585_v0  }
  0x8c   : > { %v4847_v62 = vsel %vm3438_vm12, 4294967295, %v4846_v62  ;;  %v4851_v8 = vmov 0  ;;  %vm3460_vm8 = vcmp.ne.s32.totalorder %v2234_v58, 0  ;;  %v4853_v26 = vmov 0  ;;  %vm3480_vm7 = vmxor %vm3417_vm5, %vm2694_vm3  ;;  %697 = vperm.xlu0 %2592, %v584_v41  }
  0x8d   : > { %4848 = vst [vmem:[#allocation38_spill] sm:$0xff] %v4847_v62  ;;  %v4852_v8 = vsel %vm3456_vm9, 4294967295, %v4851_v8  ;;  %v4854_v26 = vsel %vm3460_vm8, 4294967295, %v4853_v26  ;;  %v2242_v40 = vunpack.c.0.s8 %v3383_v49  ;;  %vm3473_vm1 = vcmp.ne.s32.totalorder %v2199_v48, 0  ;;  %vm3496_vm5 = vmxor %vm3438_vm12, %vm2694_vm3  ;;  %v2546_v62 = vld [vmem:[%s2850_s11 + $0x7c] sm:$0xf]  }
  0x8e   : > { %4855 = vst [vmem:[#allocation39_spill] sm:$0xff] %v4854_v26  ;;  %v4858_v54 = vmov 0  ;;  %v4861_v58 = vmov 0  ;;  %vm3484_vm9 = vcmp.ne.s32.totalorder %v2239_v38, 0  ;;  %v4863_v20 = vmov 0  ;;  %vm3517_vm12 = vmxor %vm3460_vm8, %vm2694_vm3 }
  0x8f   : > { %v4859_v54 = vsel %vm3473_vm1, 4294967295, %v4858_v54  ;;  %v4862_v58 = vsel %vm3480_vm7, 4294967295, %v4861_v58  ;;  %v4864_v20 = vsel %vm3484_vm9, 4294967295, %v4863_v20  ;;  %v2247_v30 = vunpack.c.3.s8 %v3383_v49  ;;  %vm3538_vm8 = vmxor %vm3484_vm9, %vm2694_vm3 }
  0x90   : > { %4860 = vst [vmem:[#allocation40_spill] sm:$0xff] %v4859_v54  ;;  %4865 = vst [vmem:[#allocation41_spill] sm:$0xff] %v4864_v20  ;;  %v2492_v14 = vpack.c.bf16 %v1085_v45, %v1084_v7  ;;  %vm3489_vm0 = vcmp.ne.s32.totalorder %v2198_v3, 0  ;;  %v4866_v48 = vmov 0  ;;  %v4869_v23 = vmov 0  ;;  %v1086_v3 = vld [vmem:[%s4552_s2 + $0x70] sm:$0xff] }
  0x91   : > { %v4867_v48 = vsel %vm3489_vm0, 4294967295, %v4866_v48  ;;  %v4870_v23 = vsel %vm3496_vm5, 4294967295, %v4869_v23  ;;  %vm3500_vm7 = vcmp.ne.s32.totalorder %v2238_v56, 0  ;;  %v4871_v38 = vmov 0 }
  0x92   : > { %4868 = vst [vmem:[#allocation42_spill] sm:$0xff] %v4867_v48  ;;  %v4872_v38 = vsel %vm3500_vm7, 4294967295, %v4871_v38  ;;  %v2246_v7 = vunpack.c.2.s8 %v3383_v49  ;;  %v587_v56 = vsel %vm3275_vm13, 1, %v4783_v9  ;;  %v4874_v45 = vmov 0  ;;  %vm3531_vm13 = vmxor %vm3473_vm1, %vm2694_vm3  ;;  %2493 = vmatprep.subr.bf16.mxu0 %v2492_v14  ;;  %2506 = vmatprep.subr.bf16.mxu1 %v2492_v14 }
  0x93   : > { %4873 = vst [vmem:[#allocation43_spill] sm:$0xff] %v4872_v38  ;;  %v4875_v45 = vsel %vm3517_vm12, 4294967295, %v4874_v45  ;;  %vm3521_vm5 = vcmp.ne.s32.totalorder %v2243_v5, 0  ;;  %v4876_v49 = vmov 0  ;;  %v2251_v0 = vunpack.c.1.s8 %v2544_v59  ;;  %vm3557_vm9 = vmxor %vm3500_vm7, %vm2694_vm3  ;;  %706 = vperm.xlu1 %2593, %v587_v56   ;;  %2495 = vmatpush3.bf16.msra.mxu0 %v2492_v14 }
  0x94   : > { %v4877_v49 = vsel %vm3521_vm5, 4294967295, %v4876_v49  ;;  %v586_v41 = vsel %vm3298_vm15, 1, %v4783_v9  ;;  %vm3542_vm12 = vcmp.ne.s32.totalorder %v2242_v40, 0  ;;  %v4882_v26 = vmov 0  ;;  %vm3550_vm15 = vmxor %vm3489_vm0, %vm2694_vm3  ;;  %2514 = vmatpush3.bf16.msra.mxu1 %v2492_v14 }
  0x95   : > { %v4883_v26 = vsel %vm3542_vm12, 4294967295, %v4882_v26  ;;  %v2250_v55 = vunpack.c.0.s8 %v2544_v59  ;;  %v4886_v20 = vmov 0  ;;  %vm3561_vm1 = vcmp.ne.s32.totalorder %v2247_v30, 0  ;;  %vm3568_vm0 = vmxor %vm3521_vm5, %vm2694_vm3  ;;  %703 = vperm.xlu0 %2592, %v586_v41  }
  0x96   : > { %v4887_v20 = vsel %vm3557_vm9, 4294967295, %v4886_v20  ;;  %v4888_v40 = vmov 0  ;;  %v2255_v4 = vunpack.c.3.s8 %v2544_v59  ;;  %v2496_v1 = vpack.c.bf16 %v1087_v43, %v1086_v3  ;;  %vm3582_vm9 = vmxor %vm3542_vm12, %vm2694_vm3 }
  0x97   : > { %v4889_v40 = vsel %vm3561_vm1, 4294967295, %v4888_v40  ;;  %vm3572_vm7 = vcmp.ne.s32.totalorder %v2246_v7, 0  ;;  %v4892_v38 = vmov 0  ;;  %v2254_v30 = vunpack.c.2.s8 %v2544_v59 }
  0x98   : > { %v4893_v38 = vsel %vm3572_vm7, 4294967295, %v4892_v38  ;;  %v589_v3 = vsel %vm3362_vm11, 1, %v4783_v9  ;;  %v4894_v27 = vmov 0  ;;  %vm3586_vm5 = vcmp.ne.s32.totalorder %v2251_v0, 0  ;;  %vm3596_vm11 = vmxor %vm3561_vm1, %vm2694_vm3  ;;  %2497 = vmatprep.subr.bf16.mxu0 %v2496_v1  ;;  %2507 = vmatprep.subr.bf16.mxu1 %v2496_v1 }
  0x99   : > { %v4895_v27 = vsel %vm3582_vm9, 4294967295, %v4894_v27  ;;  %v4896_v43 = vmov 0  ;;  %v2259_v7 = vunpack.c.1.s8 %v2546_v62  ;;  %v588_v59 = vsel %vm3388_vm4, 1, %v4783_v9  ;;  %vm3607_vm9 = vmxor %vm3572_vm7, %vm2694_vm3  ;;  %712 = vperm.xlu1 %2593, %v589_v3   ;;  %2499 = vmatpush3.bf16.msra.mxu0 %v2496_v1  ;;  %v1007_v3 = vld [vmem:[%s2834_s8 + $0x1f8] sm:$0xff] }
  0x9a   : > { %v4897_v43 = vsel %vm3586_vm5, 4294967295, %v4896_v43  ;;  %v4898_v52 = vmov 0  ;;  %vm3600_vm12 = vcmp.ne.s32.totalorder %v2250_v55, 0  ;;  %v4900_v56 = vmov 0  ;;  %vm3618_vm1 = vmxor %vm3586_vm5, %vm2694_vm3  ;;  %709 = vperm.xlu0 %2592, %v588_v59   ;;  %2515 = vmatpush3.bf16.msra.mxu1 %v2496_v1 }
  0x9b   : > { %v4899_v52 = vsel %vm3596_vm11, 4294967295, %v4898_v52  ;;  %v4901_v56 = vsel %vm3600_vm12, 4294967295, %v4900_v56  ;;  %v2258_v0 = vunpack.c.0.s8 %v2546_v62  ;;  %vm3611_vm4 = vcmp.ne.s32.totalorder %v2255_v4, 0  ;;  %vm3632_vm7 = vmxor %vm3600_vm12, %vm2694_vm3 }
  0x9c   : > { %v4906_v62 = vmov 0  ;;  %vm3622_vm11 = vcmp.ne.s32.totalorder %v2254_v30, 0  ;;  %v4908_v55 = vmov 0  ;;  %v591_v4 = vsel %vm3449_vm6, 1, %v4783_v9 }
  0x9d   : > { %v4907_v62 = vsel %vm3618_vm1, 4294967295, %v4906_v62  ;;  %v4909_v55 = vsel %vm3622_vm11, 4294967295, %v4908_v55  ;;  %vm3636_vm5 = vcmp.ne.s32.totalorder %v2259_v7, 0  ;;  %v590_v30 = vsel %vm3469_vm10, 1, %v4783_v9  ;;  %vm3646_vm1 = vmxor %vm3611_vm4, %vm2694_vm3  ;;  %718 = vperm.xlu1 %2593, %v591_v4  }
  0x9e   : > { %4910 = vst [vmem:[#allocation44_spill] sm:$0xff] %v4909_v55  ;;  %vm3650_vm6 = vcmp.ne.s32.totalorder %v2258_v0, 0  ;;  %v4917_v59 = vmov 0  ;;  %vm3657_vm12 = vmxor %vm3622_vm11, %vm2694_vm3  ;;  %715 = vperm.xlu0 %2592, %v590_v30   ;;  %v593_v0 = vsel %vm3531_vm13, 1, %v4783_v9  ;;  %v592_v1 = vsel %vm3550_vm15, 1, %v4783_v9  ;;  %v944_v55 = vld [vmem:[%s2834_s8] sm:$0xff] }
  0x9f   : > { %v4918_v59 = vsel %vm3650_vm6, 4294967295, %v4917_v59  ;;  %vm3664_vm10 = vmxor %vm3636_vm5, %vm2694_vm3  ;;  %v595_v4 = vsel %vm3149_vm14, 1, %v4783_v9  ;;  %vm4925_vm13 = vnez %v4754_v19  ;;  %vm4928_vm15 = vnez %v4779_v63 }
  0xa0   : > { %vm3674_vm11 = vmxor %vm3650_vm6, %vm2694_vm3  ;;  %v594_v36 = vsel %vm4925_vm13, 1, %v4783_v9  ;;  %vm4926_vm3 = vnez %v4761_v33  ;;  %vm4927_vm6 = vnez %v4771_v46  ;;  %v599_v6 = vsel %vm4928_vm15, 1, %v4783_v9 }
  0xa1   : > { %724 = vperm.xlu1 %2593, %v593_v0   ;;  %v597_v30 = vsel %vm4926_vm3, 1, %v4783_v9  ;;  %v596_v54 = vsel %vm4927_vm6, 1, %v4783_v9  ;;  %vm4929_vm14 = vnez %v4785_v16  ;;  %vm4930_vm13 = vnez %v4792_v25 }
  0xa2   : > { %721 = vperm.xlu0 %2592, %v592_v1   ;;  %v598_v19 = vsel %vm4929_vm14, 1, %v4783_v9  ;;  %v601_v33 = vsel %vm4930_vm13, 1, %v4783_v9  ;;  %vm4931_vm3 = vnez %v4802_v28  ;;  %vm4932_vm6 = vnez %v4810_v50 }
  0xa3   : > { %v600_v46 = vsel %vm4931_vm3, 1, %v4783_v9  ;;  %v603_v63 = vsel %vm4932_vm6, 1, %v4783_v9  ;;  %vm4933_vm15 = vnez %v4815_v32  ;;  %v605_v25 = vsel %vm3373_vm2, 1, %v4783_v9 }
  0xa4   : > { %v602_v16 = vsel %vm4933_vm15, 1, %v4783_v9  ;;  %vm4934_vm14 = vnez %v4832_v47  ;;  %vm4935_vm13 = vnez %v4840_v61  ;;  %vm4936_vm3 = vnez %v4845_v2 }
  0xa5   : > { %730 = vperm.xlu1 %2593, %v595_v4   ;;  %v604_v28 = vsel %vm4934_vm14, 1, %v4783_v9  ;;  %v607_v50 = vsel %vm4935_vm13, 1, %v4783_v9  ;;  %v606_v32 = vsel %vm4936_vm3, 1, %v4783_v9  ;;  %vm4937_vm6 = vnez %v4852_v8 }
  0xa6   : > { %727 = vperm.xlu0 %2592, %v594_v36   ;;  %v609_v17 = vsel %vm4937_vm6, 1, %v4783_v9  ;;  %vm4938_vm2 = vnez %v4862_v58  ;;  %vm4939_vm15 = vnez %v4870_v23  ;;  %vm4940_vm14 = vnez %v4875_v45 }
  0xa7   : > { %v608_v47 = vsel %vm4938_vm2, 1, %v4783_v9  ;;  %v611_v61 = vsel %vm4939_vm15, 1, %v4783_v9  ;;  %v610_v2 = vsel %vm4940_vm14, 1, %v4783_v9  ;;  %v613_v8 = vsel %vm3538_vm8, 1, %v4783_v9 }
  0xa8   : > { %vm4941_vm13 = vnez %v4887_v20  ;;  %v615_v23 = vsel %vm3568_vm0, 1, %v4783_v9  ;;  %vm4942_vm3 = vnez %v4895_v27  ;;  %vm4943_vm6 = vnez %v4899_v52 }
  0xa9   : > { %736 = vperm.xlu1 %2593, %v597_v30   ;;  %v612_v58 = vsel %vm4941_vm13, 1, %v4783_v9  ;;  %v614_v45 = vsel %vm4942_vm3, 1, %v4783_v9  ;;  %v617_v5 = vsel %vm4943_vm6, 1, %v4783_v9  ;;  %v616_v20 = vsel %vm3607_vm9, 1, %v4783_v9 }
  0xaa   : > { %733 = vperm.xlu0 %2592, %v596_v54   ;;  %vm4944_vm8 = vnez %v4907_v62  ;;  %v618_v27 = vsel %vm3632_vm7, 1, %v4783_v9  ;;  %v621_v52 = vsel %vm3646_vm1, 1, %v4783_v9  ;;  %v620_v41 = vsel %vm3657_vm12, 1, %v4783_v9  ;;  %v945_v54 = vld [vmem:[%s2834_s8 + $0x8] sm:$0xff] }
  0xab   : > { %v619_v48 = vsel %vm4944_vm8, 1, %v4783_v9  ;;  %v493_v0 = vlaneseq  ;;  %v623_v62 = vsel %vm3664_vm10, 1, %v4783_v9  ;;  %v622_v14 = vsel %vm3674_vm11, 1, %v4783_v9 }
  0xac   : > { %vm4945_vm0 = vnez %v4668_v13  ;;  %vm4946_vm1 = vnez %v4664_v11  ;;  %vm4947_vm12 = vnez %v4666_v12  ;;  %vm4948_vm10 = vnez %v4662_v10 }
  0xad   : > { %742 = vperm.xlu1 %2593, %v599_v6   ;;  %v3771_v1 = vand.u32 127, %v493_v0  ;;  %v1091_v21 = vsel %vm4945_vm0, 1, %v4783_v9  ;;  %v1090_v7 = vsel %vm4946_vm1, 1, %v4783_v9  ;;  %v1093_v36 = vsel %vm4947_vm12, 1, %v4783_v9  ;;  %v946_v6 = vld [vmem:[%s2834_s8 + $0x10] sm:$0xff] }
  0xae   : > { %739 = vperm.xlu0 %2592, %v598_v19   ;;  %v1092_v11 = vsel %vm4948_vm10, 1, %v4783_v9  ;;  %vm4949_vm14 = vnez %v4670_v15  ;;  %vm4950_vm6 = vnez %v4672_v18  ;;  %v948_v15 = vld [vmem:[%s2834_s8 + $0x20] sm:$0xff]  ;;  %vm4952_vm10 = vnez %v4676_v24 }
  0xaf   : > { %vm495_vm7 = vcmp.lt.s32.totalorder %v3771_v1, 64  ;;  %v1095_v12 = vsel %vm4949_vm14, 1, %v4783_v9  ;;  %v1094_v10 = vsel %vm4950_vm6, 1, %v4783_v9  ;;  %vm4953_vm14 = vnez %v4678_v29  ;;  %v952_v29 = vld [vmem:[%s2834_s8 + $0x40] sm:$0xff] }
  0xb0   : > { %vm4954_vm6 = vnez %v4680_v31 }
  0xb1   : > { %748 = vperm.xlu1 %2593, %v601_v33   ;;  %v1098_v24 = vsel %vm4954_vm6, 1, %v4783_v9 }
  0xb2   : > { %745 = vperm.xlu0 %2592, %v600_v46   ;;  %v947_v46 = vld [vmem:[%s2834_s8 + $0x18] sm:$0xff] }
  0xb5   : > { %754 = vperm.xlu1 %2593, %v603_v63   ;;  %v1096_v63 = vsel %vm4952_vm10, 1, %v4783_v9 }
  0xb6   : > { %751 = vperm.xlu0 %2592, %v602_v16  }
  0xb9   : > { %760 = vperm.xlu1 %2593, %v605_v25  }
  0xba   : > { %757 = vperm.xlu0 %2592, %v604_v28   ;;  %v949_v28 = vld [vmem:[%s2834_s8 + $0x28] sm:$0xff] }
  0xbd   : > { %766 = vperm.xlu1 %2593, %v607_v50   ;;  %v1099_v50 = vsel %vm4953_vm14, 1, %v4783_v9 }
  0xbe   : > { %763 = vperm.xlu0 %2592, %v606_v32  }
  0xc1   : > { %772 = vperm.xlu1 %2593, %v609_v17  }
  0xc2   : > { %769 = vperm.xlu0 %2592, %v608_v47   ;;  %v951_v47 = vld [vmem:[%s2834_s8 + $0x38] sm:$0xff] }
  0xc5   : > { %778 = vperm.xlu1 %2593, %v611_v61  }
  0xc6   : > { %775 = vperm.xlu0 %2592, %v610_v2  }
  0xc9   : > { %784 = vperm.xlu1 %2593, %v613_v8  }
  0xca   : > { %781 = vperm.xlu0 %2592, %v612_v58   ;;  %v953_v58 = vld [vmem:[%s2834_s8 + $0x48] sm:$0xff] }
  0xcd   : > { %790 = vperm.xlu1 %2593, %v615_v23  }
  0xce   : > { %787 = vperm.xlu0 %2592, %v614_v45  }
  0xd1   : > { %796 = vperm.xlu1 %2593, %v617_v5  }
  0xd2   : > { %793 = vperm.xlu0 %2592, %v616_v20   ;;  %v955_v20 = vld [vmem:[%s2834_s8 + $0x58] sm:$0xff] }
  0xd4   : > { %v632_v39 = vpop.permute.xlu1 %631 }
  0xd5   : > { %802 = vperm.xlu1 %2593, %v619_v48   ;;  %v626_v4 = vpop.permute.xlu0 %625  ;;  %vm818_vm2 = vcmp.eq.s32.totalorder %v632_v39, 1 }
  0xd6   : > { %799 = vperm.xlu0 %2592, %v618_v27   ;;  %vm816_vm9 = vcmp.eq.s32.totalorder %v626_v4, 1  ;;  %vm882_vm8 = vmor %vm495_vm7, %vm818_vm2 }
  0xd7   : > { %vm880_vm11 = vmor %vm495_vm7, %vm816_vm9  ;;  %vm4951_vm9 = vnez %v4674_v22  ;;  %v950_v22 = vld [vmem:[%s2834_s8 + $0x30] sm:$0xff] }
  0xd8   : > { %2372 = vmatprep.mubr.msk.f32.mxu0 %vm880_vm11, %v944_v55  ;;  %v635_v13 = vpop.permute.xlu1 %634  ;;  %v1097_v18 = vsel %vm4951_vm9, 1, %v4783_v9 }
  0xd9   : > { %808 = vperm.xlu1 %2593, %v621_v52   ;;  %v629_v30 = vpop.permute.xlu0 %628  ;;  %vm819_vm13 = vcmp.eq.s32.totalorder %v635_v13, 1  ;;  %v962_v13 = vld [vmem:[%s2834_s8 + $0x90] sm:$0xff] }
  0xda   : > { %805 = vperm.xlu0 %2592, %v620_v41   ;;  %vm817_vm15 = vcmp.eq.s32.totalorder %v629_v30, 1  ;;  %vm883_vm0 = vmor %vm495_vm7, %vm819_vm13  ;;  %v957_v41 = vld [vmem:[%s2834_s8 + $0x68] sm:$0xff]  ;;  %v4967_v30 = vld [vmem:[#allocation10_spill] sm:$0xff] }
  0xdb   : > { %vm881_vm3 = vmor %vm495_vm7, %vm817_vm15 }
  0xdc   : > { %2373 = vmatmul.mubr.msk.f32.vlgmr.msra.gmra.mrb[0].mxu0 %vm881_vm3, %v945_v54  ;;  %v641_v19 = vpop.permute.xlu1 %640 }
  0xdd   : > { %814 = vperm.xlu1 %2593, %v623_v62   ;;  %2375 = vmatprep.mubr.msk.f32.mxu0 %vm882_vm8, %v946_v6  ;;  %v638_v33 = vpop.permute.xlu0 %637  ;;  %vm821_vm12 = vcmp.eq.s32.totalorder %v641_v19, 1  ;;  %v4969_v6 = vld [vmem:[#allocation11_spill] sm:$0xff] }
  0xde   : > { %811 = vperm.xlu0 %2592, %v622_v14   ;;  %vm820_vm1 = vcmp.eq.s32.totalorder %v638_v33, 1  ;;  %vm885_vm2 = vmor %vm495_vm7, %vm821_vm12  ;;  %v963_v33 = vld [vmem:[%s2834_s8 + $0x98] sm:$0xff] }
  0xdf   : > { %vm884_vm11 = vmor %vm495_vm7, %vm820_vm1  ;;  %vm4955_vm1 = vnez %v4682_v35  ;;  %v954_v35 = vld [vmem:[%s2834_s8 + $0x50] sm:$0xff] }
  0xe0   : > { %2376 = vmatmul.mubr.msk.f32.gmra.mrb[2].mxu0 %vm883_vm0, %v947_v46  ;;  %v647_v16 = vpop.permute.xlu1 %646  ;;  %v1101_v61 = vsel %vm4955_vm1, 1, %v4783_v9  ;;  %v964_v46 = vld [vmem:[%s2834_s8 + $0xa0] sm:$0xff] }
  0xe1   : > { %1158 = vperm.xlu1 %2593, %v1091_v21   ;;  %2378 = vmatprep.mubr.msk.f32.mxu0 %vm884_vm11, %v948_v15  ;;  %v644_v25 = vpop.permute.xlu0 %643  ;;  %vm823_vm13 = vcmp.eq.s32.totalorder %v647_v16, 1  ;;  %vm4956_vm11 = vnez %v4684_v37  ;;  %v959_v21 = vld [vmem:[%s2834_s8 + $0x78] sm:$0xff]  ;;  %v4971_v15 = vld [vmem:[#allocation12_spill] sm:$0xff] }
  0xe2   : > { %1155 = vperm.xlu0 %2592, %v1090_v7   ;;  %vm822_vm15 = vcmp.eq.s32.totalorder %v644_v25, 1  ;;  %vm887_vm8 = vmor %vm495_vm7, %vm823_vm13  ;;  %v1100_v31 = vsel %vm4956_vm11, 1, %v4783_v9  ;;  %v4963_v7 = vld [vmem:[#allocation8_spill] sm:$0xff] }
  0xe3   : > { %vm886_vm3 = vmor %vm495_vm7, %vm822_vm15  ;;  %vm4957_vm15 = vnez %v4686_v42  ;;  %v956_v42 = vld [vmem:[%s2834_s8 + $0x60] sm:$0xff] }
  0xe4   : > { %2379 = vmatmul.mubr.msk.f32.gmra.mrb[4].mxu0 %vm885_vm2, %v949_v28  ;;  %v653_v32 = vpop.permute.xlu1 %652  ;;  %v1103_v23 = vsel %vm4957_vm15, 1, %v4783_v9 }
  0xe5   : > { %1164 = vperm.xlu1 %2593, %v1093_v36   ;;  %2381 = vmatprep.mubr.msk.f32.mxu0 %vm886_vm3, %v950_v22  ;;  %v650_v17 = vpop.permute.xlu0 %649  ;;  %vm825_vm9 = vcmp.eq.s32.totalorder %v653_v32, 1  ;;  %vm4958_vm3 = vnez %v4688_v44  ;;  %v965_v22 = vld [vmem:[%s2834_s8 + $0xa8] sm:$0xff] }
  0xe6   : > { %1161 = vperm.xlu0 %2592, %v1092_v11   ;;  %vm824_vm0 = vcmp.eq.s32.totalorder %v650_v17, 1  ;;  %vm889_vm10 = vmor %vm495_vm7, %vm825_vm9  ;;  %v1102_v37 = vsel %vm4958_vm3, 1, %v4783_v9  ;;  %v961_v11 = vld [vmem:[%s2834_s8 + $0x88] sm:$0xff]  ;;  %v4977_v17 = vld [vmem:[#allocation18_spill] sm:$0xff] }
  0xe7   : > { %vm888_vm12 = vmor %vm495_vm7, %vm824_vm0  ;;  %vm4959_vm0 = vnez %v4690_v51  ;;  %v958_v51 = vld [vmem:[%s2834_s8 + $0x70] sm:$0xff] }
  0xe8   : > { %2382 = vmatmul.mubr.msk.f32.gmra.mrb[6].mxu0 %vm887_vm8, %v951_v47  ;;  %v659_v2 = vpop.permute.xlu1 %658  ;;  %v1105_v48 = vsel %vm4959_vm0, 1, %v4783_v9 }
  0xe9   : > { %1170 = vperm.xlu1 %2593, %v1095_v12   ;;  %2384 = vmatprep.mubr.msk.f32.mxu0 %vm888_vm12, %v952_v29  ;;  %v656_v8 = vpop.permute.xlu0 %655  ;;  %vm827_vm14 = vcmp.eq.s32.totalorder %v659_v2, 1  ;;  %vm4960_vm12 = vnez %v4692_v53  ;;  %v968_v2 = vld [vmem:[%s2834_s8 + $0xc0] sm:$0xff] }
  0xea   : > { %1167 = vperm.xlu0 %2592, %v1094_v10   ;;  %vm826_vm2 = vcmp.eq.s32.totalorder %v656_v8, 1  ;;  %vm891_vm6 = vmor %vm495_vm7, %vm827_vm14  ;;  %v1104_v44 = vsel %vm4960_vm12, 1, %v4783_v9  ;;  %v4979_v8 = vld [vmem:[#allocation22_spill] sm:$0xff] }
  0xeb   : > { %vm890_vm13 = vmor %vm495_vm7, %vm826_vm2  ;;  %vm4961_vm2 = vnez %v4694_v57  ;;  %v960_v57 = vld [vmem:[%s2834_s8 + $0x80] sm:$0xff] }
  0xec   : > { %2385 = vmatmul.mubr.msk.f32.gmra.mrb[8].mxu0 %vm889_vm10, %v953_v58  ;;  %v665_v45 = vpop.permute.xlu1 %664  ;;  %v1107_v0 = vsel %vm4961_vm2, 1, %v4783_v9 }
  0xed   : > { %1176 = vperm.xlu1 %2593, %v1097_v18   ;;  %2387 = vmatprep.mubr.msk.f32.mxu0 %vm890_vm13, %v954_v35  ;;  %v662_v5 = vpop.permute.xlu0 %661  ;;  %vm829_vm1 = vcmp.eq.s32.totalorder %v665_v45, 1  ;;  %vm4962_vm13 = vnez %v4696_v60  ;;  %v4965_v60 = vld [vmem:[#allocation9_spill] sm:$0xff]  ;;  %v4981_v35 = vld [vmem:[#allocation24_spill] sm:$0xff] }
  0xee   : > { %1173 = vperm.xlu0 %2592, %v1096_v63   ;;  %vm828_vm8 = vcmp.eq.s32.totalorder %v662_v5, 1  ;;  %vm893_vm11 = vmor %vm495_vm7, %vm829_vm1  ;;  %v1106_v53 = vsel %vm4962_vm13, 1, %v4783_v9  ;;  %v4973_v63 = vld [vmem:[#allocation13_spill] sm:$0xff] }
  0xef   : > { %vm892_vm9 = vmor %vm495_vm7, %vm828_vm8  ;;  %vm4964_vm8 = vnez %v4963_v7  ;;  %v969_v5 = vld [vmem:[%s2834_s8 + $0xc8] sm:$0xff] }
  0xf0   : > { %2388 = vmatmul.mubr.msk.f32.gmra.mrb[10].mxu0 %vm891_vm6, %v955_v20  ;;  %v671_v27 = vpop.permute.xlu1 %670  ;;  %v1109_v39 = vsel %vm4964_vm8, 1, %v4783_v9  ;;  %v970_v20 = vld [vmem:[%s2834_s8 + $0xd0] sm:$0xff] }
  0xf1   : > { %1182 = vperm.xlu1 %2593, %v1099_v50   ;;  %2390 = vmatprep.mubr.msk.f32.mxu0 %vm892_vm9, %v956_v42  ;;  %v668_v52 = vpop.permute.xlu0 %667  ;;  %vm831_vm15 = vcmp.eq.s32.totalorder %v671_v27, 1  ;;  %vm4966_vm9 = vnez %v4965_v60  ;;  %v966_v50 = vld [vmem:[%s2834_s8 + $0xb0] sm:$0xff]  ;;  %v4983_v42 = vld [vmem:[#allocation28_spill] sm:$0xff] }
  0xf2   : > { %1179 = vperm.xlu0 %2592, %v1098_v24   ;;  %vm830_vm10 = vcmp.eq.s32.totalorder %v668_v52, 1  ;;  %vm895_vm3 = vmor %vm495_vm7, %vm831_vm15  ;;  %v1108_v4 = vsel %vm4966_vm9, 1, %v4783_v9  ;;  %v4975_v24 = vld [vmem:[#allocation15_spill] sm:$0xff]  ;;  %v974_v60 = vld [vmem:[%s2834_s8 + $0xf0] sm:$0xff] }
  0xf3   : > { %vm894_vm14 = vmor %vm495_vm7, %vm830_vm10  ;;  %vm4968_vm10 = vnez %v4967_v30 }
  0xf4   : > { %2391 = vmatmul.mubr.msk.f32.gmra.mrb[12].mxu0 %vm893_vm11, %v957_v41  ;;  %v677_v62 = vpop.permute.xlu1 %676  ;;  %v1111_v54 = vsel %vm4968_vm10, 1, %v4783_v9 }
  0xf5   : > { %1188 = vperm.xlu1 %2593, %v1101_v61   ;;  %2393 = vmatprep.mubr.msk.f32.mxu0 %vm894_vm14, %v958_v51  ;;  %v674_v14 = vpop.permute.xlu0 %673  ;;  %vm833_vm0 = vcmp.eq.s32.totalorder %v677_v62, 1  ;;  %vm4970_vm14 = vnez %v4969_v6  ;;  %v971_v51 = vld [vmem:[%s2834_s8 + $0xd8] sm:$0xff]  ;;  %v976_v6 = vld [vmem:[%s2834_s8 + $0x100] sm:$0xff] }
  0xf6   : > { %1185 = vperm.xlu0 %2592, %v1100_v31   ;;  %vm832_vm6 = vcmp.eq.s32.totalorder %v674_v14, 1  ;;  %vm897_vm12 = vmor %vm495_vm7, %vm833_vm0  ;;  %v1110_v12 = vsel %vm4970_vm14, 1, %v4783_v9  ;;  %v967_v31 = vld [vmem:[%s2834_s8 + $0xb8] sm:$0xff]  ;;  %v4989_v14 = vld [vmem:[#allocation36_spill] sm:$0xff] }
  0xf7   : > { %vm896_vm1 = vmor %vm495_vm7, %vm832_vm6  ;;  %vm4972_vm6 = vnez %v4971_v15 }
  0xf8   : > { %2394 = vmatmul.mubr.msk.f32.gmra.mrb[14].mxu0 %vm895_vm3, %v959_v21  ;;  %v683_v55 = vpop.permute.xlu1 %682  ;;  %v1113_v18 = vsel %vm4972_vm6, 1, %v4783_v9 }
  0xf9   : > { %1194 = vperm.xlu1 %2593, %v1103_v23   ;;  %2396 = vmatprep.mubr.msk.f32.mxu0 %vm896_vm1, %v960_v57  ;;  %v680_v36 = vpop.permute.xlu0 %679  ;;  %vm835_vm2 = vcmp.eq.s32.totalorder %v683_v55, 1  ;;  %vm4974_vm1 = vnez %v4973_v63  ;;  %v978_v63 = vld [vmem:[%s2834_s8 + $0x110] sm:$0xff] }
  0xfa   : > { %1191 = vperm.xlu0 %2592, %v1102_v37   ;;  %vm834_vm11 = vcmp.eq.s32.totalorder %v680_v36, 1  ;;  %vm899_vm13 = vmor %vm495_vm7, %vm835_vm2  ;;  %v1112_v16 = vsel %vm4974_vm1, 1, %v4783_v9  ;;  %v4993_v36 = vld [vmem:[#allocation42_spill] sm:$0xff] }
  0xfb   : > { %vm898_vm15 = vmor %vm495_vm7, %vm834_vm11  ;;  %vm4976_vm11 = vnez %v4975_v24 }
  0xfc   : > { %2397 = vmatmul.mubr.msk.f32.gmra.mrb[16].mxu0 %vm897_vm12, %v961_v11  ;;  %v689_v10 = vpop.permute.xlu1 %688  ;;  %v1115_v32 = vsel %vm4976_vm11, 1, %v4783_v9 }
  0xfd   : > { %1200 = vperm.xlu1 %2593, %v1105_v48   ;;  %2399 = vmatprep.mubr.msk.f32.mxu0 %vm898_vm15, %v962_v13  ;;  %v686_v19 = vpop.permute.xlu0 %685  ;;  %vm837_vm8 = vcmp.eq.s32.totalorder %v689_v10, 1  ;;  %vm4978_vm15 = vnez %v4977_v17  ;;  %v4995_v10 = vld [vmem:[#allocation14_spill] sm:$0xff]  ;;  %v980_v17 = vld [vmem:[%s2834_s8 + $0x120] sm:$0xff] }
  0xfe   : > { %1197 = vperm.xlu0 %2592, %v1104_v44   ;;  %vm836_vm3 = vcmp.eq.s32.totalorder %v686_v19, 1  ;;  %vm901_vm9 = vmor %vm495_vm7, %vm837_vm8  ;;  %v1114_v47 = vsel %vm4978_vm15, 1, %v4783_v9  ;;  %v4985_v44 = vld [vmem:[#allocation30_spill] sm:$0xff] }
  0xff   : > { %vm900_vm0 = vmor %vm495_vm7, %vm836_vm3  ;;  %vm4980_vm3 = vnez %v4979_v8 }
 0x100   : > { %2400 = vmatmul.mubr.msk.f32.gmra.mrb[18].mxu0 %vm899_vm13, %v963_v33  ;;  %v1117_v58 = vsel %vm4980_vm3, 1, %v4783_v9  ;;  %v4997_v33 = vld [vmem:[#allocation16_spill] sm:$0xff] }
 0x101   : > { %1206 = vperm.xlu1 %2593, %v1107_v0   ;;  %v695_v25 = vpop.permute.xlu1 %694  ;;  %2402 = vmatprep.mubr.msk.f32.mxu0 %vm900_vm0, %v964_v46  ;;  %vm4982_vm0 = vnez %v4981_v35  ;;  %v972_v0 = vld [vmem:[%s2834_s8 + $0xe0] sm:$0xff]  ;;  %v982_v35 = vld [vmem:[%s2834_s8 + $0x130] sm:$0xff] }
 0x102   : > { %1203 = vperm.xlu0 %2592, %v1106_v53   ;;  %vm839_vm10 = vcmp.eq.s32.totalorder %v695_v25, 1  ;;  %v1116_v23 = vsel %vm4982_vm0, 1, %v4783_v9  ;;  %v4987_v53 = vld [vmem:[#allocation33_spill] sm:$0xff] }
 0x103   : > { %v692_v28 = vpop.permute.xlu0 %691  ;;  %vm903_vm14 = vmor %vm495_vm7, %vm839_vm10  ;;  %v4999_v25 = vld [vmem:[#allocation17_spill] sm:$0xff] }
 0x104   : > { %vm838_vm12 = vcmp.eq.s32.totalorder %v692_v28, 1  ;;  %2403 = vmatmul.mubr.msk.f32.gmra.mrb[20].mxu0 %vm901_vm9, %v965_v22  ;;  %v5001_v22 = vld [vmem:[#allocation19_spill] sm:$0xff] }
 0x105   : > { %1212 = vperm.xlu1 %2593, %v1109_v39   ;;  %vm902_vm2 = vmor %vm495_vm7, %vm838_vm12  ;;  %vm4984_vm12 = vnez %v4983_v42  ;;  %v973_v39 = vld [vmem:[%s2834_s8 + $0xe8] sm:$0xff] }
 0x106   : > { %1209 = vperm.xlu0 %2592, %v1108_v4   ;;  %2405 = vmatprep.mubr.msk.f32.mxu0 %vm902_vm2, %v966_v50  ;;  %v1119_v48 = vsel %vm4984_vm12, 1, %v4783_v9  ;;  %vm4986_vm2 = vnez %v4985_v44  ;;  %v4991_v4 = vld [vmem:[#allocation40_spill] sm:$0xff] }
 0x107   : > { %v1118_v27 = vsel %vm4986_vm2, 1, %v4783_v9  ;;  %vm4992_vm12 = vnez %v4991_v4  ;;  %v984_v44 = vld [vmem:[%s2834_s8 + $0x140] sm:$0xff] }
 0x108   : > { %2406 = vmatmul.mubr.msk.f32.gmra.mrb[22].mxu0 %vm903_vm14, %v967_v31  ;;  %v1123_v55 = vsel %vm4992_vm12, 1, %v4783_v9  ;;  %vm5000_vm12 = vnez %v4999_v25  ;;  %v5005_v31 = vld [vmem:[#allocation21_spill] sm:$0xff] }
 0x109   : > { %1218 = vperm.xlu1 %2593, %v1111_v54   ;;  %v975_v54 = vld [vmem:[%s2834_s8 + $0xf8] sm:$0xff]  ;;  %v1127_v28 = vsel %vm5000_vm12, 1, %v4783_v9 }
 0x10a   : > { %1215 = vperm.xlu0 %2592, %v1110_v12   ;;  %v701_v29 = vpop.permute.xlu1 %700  ;;  %v977_v12 = vld [vmem:[%s2834_s8 + $0x108] sm:$0xff] }
 0x10b   : > { %v698_v61 = vpop.permute.xlu0 %697  ;;  %vm841_vm6 = vcmp.eq.s32.totalorder %v701_v29, 1  ;;  %v5003_v29 = vld [vmem:[#allocation20_spill] sm:$0xff] }
 0x10c   : > { %vm840_vm13 = vcmp.eq.s32.totalorder %v698_v61, 1  ;;  %vm905_vm1 = vmor %vm495_vm7, %vm841_vm6 }
 0x10d   : > { %1224 = vperm.xlu1 %2593, %v1113_v18   ;;  %vm904_vm8 = vmor %vm495_vm7, %vm840_vm13  ;;  %vm4988_vm13 = vnez %v4987_v53 }
 0x10e   : > { %1221 = vperm.xlu0 %2592, %v1112_v16   ;;  %2408 = vmatprep.mubr.msk.f32.mxu0 %vm904_vm8, %v968_v2  ;;  %v1121_v62 = vsel %vm4988_vm13, 1, %v4783_v9  ;;  %vm4990_vm8 = vnez %v4989_v14  ;;  %v979_v16 = vld [vmem:[%s2834_s8 + $0x118] sm:$0xff]  ;;  %v986_v14 = vld [vmem:[%s2834_s8 + $0x150] sm:$0xff] }
 0x10f   : > { %2409 = vmatmul.mubr.msk.f32.gmra.mrb[24].mxu0 %vm905_vm1, %v969_v5  ;;  %v1120_v21 = vsel %vm4990_vm8, 1, %v4783_v9  ;;  %vm4998_vm8 = vnez %v4997_v33  ;;  %v5009_v5 = vld [vmem:[#allocation25_spill] sm:$0xff]  ;;  %v991_v33 = vld [vmem:[%s2834_s8 + $0x178] sm:$0xff] }
 0x110   : > { %v1124_v46 = vsel %vm4998_vm8, 1, %v4783_v9 }
 0x111   : > { %1230 = vperm.xlu1 %2593, %v1115_v32  }
 0x112   : > { %1227 = vperm.xlu0 %2592, %v1114_v47   ;;  %v707_v37 = vpop.permute.xlu1 %706  ;;  %v981_v47 = vld [vmem:[%s2834_s8 + $0x128] sm:$0xff] }
 0x113   : > { %vm843_vm11 = vcmp.eq.s32.totalorder %v707_v37, 1  ;;  %v5007_v37 = vld [vmem:[#allocation23_spill] sm:$0xff] }
 0x114   : > { %v704_v45 = vpop.permute.xlu0 %703  ;;  %vm907_vm15 = vmor %vm495_vm7, %vm843_vm11 }
 0x115   : > { %1236 = vperm.xlu1 %2593, %v1117_v58   ;;  %vm842_vm9 = vcmp.eq.s32.totalorder %v704_v45, 1 }
 0x116   : > { %1233 = vperm.xlu0 %2592, %v1116_v23   ;;  %vm906_vm10 = vmor %vm495_vm7, %vm842_vm9  ;;  %v983_v23 = vld [vmem:[%s2834_s8 + $0x138] sm:$0xff] }
 0x117   : > { %2411 = vmatprep.mubr.msk.f32.mxu0 %vm906_vm10, %v970_v20  ;;  %vm4994_vm10 = vnez %v4993_v36  ;;  %v988_v36 = vld [vmem:[%s2834_s8 + $0x160] sm:$0xff] }
 0x118   : > { %v713_v52 = vpop.permute.xlu1 %712  ;;  %2412 = vmatmul.mubr.msk.f32.gmra.mrb[26].mxu0 %vm907_vm15, %v971_v51  ;;  %v1122_v11 = vsel %vm4994_vm10, 1, %v4783_v9  ;;  %vm5002_vm10 = vnez %v5001_v22  ;;  %v5013_v51 = vld [vmem:[#allocation27_spill] sm:$0xff]  ;;  %v993_v22 = vld [vmem:[%s2834_s8 + $0x188] sm:$0xff] }
 0x119   : > { %v710_v41 = vpop.permute.xlu0 %709  ;;  %1242 = vperm.xlu1 %2593, %v1119_v48   ;;  %vm845_vm3 = vcmp.eq.s32.totalorder %v713_v52, 1  ;;  %v1126_v50 = vsel %vm5002_vm10, 1, %v4783_v9  ;;  %v5011_v52 = vld [vmem:[#allocation26_spill] sm:$0xff] }
 0x11a   : > { %vm844_vm14 = vcmp.eq.s32.totalorder %v710_v41, 1  ;;  %1239 = vperm.xlu0 %2592, %v1118_v27   ;;  %vm909_vm0 = vmor %vm495_vm7, %vm845_vm3  ;;  %vm4996_vm3 = vnez %v4995_v10  ;;  %v985_v27 = vld [vmem:[%s2834_s8 + $0x148] sm:$0xff] }
 0x11b   : > { %vm908_vm6 = vmor %vm495_vm7, %vm844_vm14  ;;  %v1125_v19 = vsel %vm4996_vm3, 1, %v4783_v9 }
 0x11c   : > { %v719_v57 = vpop.permute.xlu1 %718  ;;  %2414 = vmatprep.mubr.msk.f32.mxu0 %vm908_vm6, %v972_v0 }
 0x11d   : > { %v716_v7 = vpop.permute.xlu0 %715  ;;  %1248 = vperm.xlu1 %2593, %v1121_v62   ;;  %vm847_vm1 = vcmp.eq.s32.totalorder %v719_v57, 1  ;;  %2415 = vmatmul.mubr.msk.f32.gmra.mrb[28].mxu0 %vm909_vm0, %v973_v39  ;;  %v5015_v57 = vld [vmem:[#allocation29_spill] sm:$0xff]  ;;  %v5017_v39 = vld [vmem:[#allocation31_spill] sm:$0xff] }
 0x11e   : > { %vm846_vm9 = vcmp.eq.s32.totalorder %v716_v7, 1  ;;  %1245 = vperm.xlu0 %2592, %v1120_v21   ;;  %vm911_vm2 = vmor %vm495_vm7, %vm847_vm1  ;;  %v987_v21 = vld [vmem:[%s2834_s8 + $0x158] sm:$0xff] }
 0x11f   : > { %vm910_vm11 = vmor %vm495_vm7, %vm846_vm9 }
 0x120   : > { %v725_v13 = vpop.permute.xlu1 %724  ;;  %2417 = vmatprep.mubr.msk.f32.mxu0 %vm910_vm11, %v974_v60 }
 0x121   : > { %vm849_vm15 = vcmp.eq.s32.totalorder %v725_v13, 1  ;;  %v722_v30 = vpop.permute.xlu0 %721  ;;  %1254 = vperm.xlu1 %2593, %v1123_v55   ;;  %2418 = vmatmul.mubr.msk.f32.gmra.mrb[30].mxu0 %vm911_vm2, %v975_v54  ;;  %v5019_v13 = vld [vmem:[#allocation32_spill] sm:$0xff]  ;;  %v5021_v54 = vld [vmem:[#allocation34_spill] sm:$0xff] }
 0x122   : > { %vm913_vm14 = vmor %vm495_vm7, %vm849_vm15  ;;  %vm848_vm13 = vcmp.eq.s32.totalorder %v722_v30, 1  ;;  %1251 = vperm.xlu0 %2592, %v1122_v11   ;;  %v989_v11 = vld [vmem:[%s2834_s8 + $0x168] sm:$0xff] }
 0x123   : > { %vm912_vm6 = vmor %vm495_vm7, %vm848_vm13  ;;  %vm5004_vm13 = vnez %v5003_v29 }
 0x124   : > { %2420 = vmatprep.mubr.msk.f32.mxu1 %vm912_vm6, %v976_v6  ;;  %v731_v15 = vpop.permute.xlu1 %730  ;;  %v1129_v61 = vsel %vm5004_vm13, 1, %v4783_v9  ;;  %vm5006_vm6 = vnez %v5005_v31  ;;  %v995_v31 = vld [vmem:[%s2834_s8 + $0x198] sm:$0xff] }
 0x125   : > { %vm851_vm0 = vcmp.eq.s32.totalorder %v731_v15, 1  ;;  %2421 = vmatmul.mubr.msk.f32.vlgmr.msra.gmra.mrb[0].mxu1 %vm913_vm14, %v977_v12  ;;  %v728_v18 = vpop.permute.xlu0 %727  ;;  %1260 = vperm.xlu1 %2593, %v1125_v19   ;;  %v1128_v2 = vsel %vm5006_vm6, 1, %v4783_v9  ;;  %v990_v19 = vld [vmem:[%s2834_s8 + $0x170] sm:$0xff] }
 0x126   : > { %vm915_vm1 = vmor %vm495_vm7, %vm851_vm0  ;;  %vm850_vm9 = vcmp.eq.s32.totalorder %v728_v18, 1  ;;  %1257 = vperm.xlu0 %2592, %v1124_v46   ;;  %v5023_v46 = vld [vmem:[#allocation35_spill] sm:$0xff]  ;;  %v5025_v18 = vld [vmem:[#allocation37_spill] sm:$0xff] }
 0x127   : > { %vm914_vm11 = vmor %vm495_vm7, %vm850_vm9  ;;  %vm5008_vm9 = vnez %v5007_v37 }
 0x128   : > { %2423 = vmatprep.mubr.msk.f32.mxu1 %vm914_vm11, %v978_v63  ;;  %v737_v24 = vpop.permute.xlu1 %736  ;;  %v1131_v45 = vsel %vm5008_vm9, 1, %v4783_v9  ;;  %vm5010_vm11 = vnez %v5009_v5  ;;  %v997_v5 = vld [vmem:[%s2834_s8 + $0x1a8] sm:$0xff] }
 0x129   : > { %vm853_vm2 = vcmp.eq.s32.totalorder %v737_v24, 1  ;;  %2424 = vmatmul.mubr.msk.f32.gmra.mrb[2].mxu1 %vm915_vm1, %v979_v16  ;;  %v734_v32 = vpop.permute.xlu0 %733  ;;  %1266 = vperm.xlu1 %2593, %v1127_v28   ;;  %v1130_v20 = vsel %vm5010_vm11, 1, %v4783_v9  ;;  %v992_v28 = vld [vmem:[%s2834_s8 + $0x180] sm:$0xff] }
 0x12a   : > { %vm917_vm15 = vmor %vm495_vm7, %vm853_vm2  ;;  %vm852_vm14 = vcmp.eq.s32.totalorder %v734_v32, 1  ;;  %1263 = vperm.xlu0 %2592, %v1126_v50   ;;  %v5027_v50 = vld [vmem:[#allocation38_spill] sm:$0xff]  ;;  %v5029_v32 = vld [vmem:[#allocation39_spill] sm:$0xff] }
 0x12b   : > { %vm916_vm3 = vmor %vm495_vm7, %vm852_vm14  ;;  %vm5012_vm14 = vnez %v5011_v52 }
 0x12c   : > { %2426 = vmatprep.mubr.msk.f32.mxu1 %vm916_vm3, %v980_v17  ;;  %v743_v8 = vpop.permute.xlu1 %742  ;;  %v1133_v41 = vsel %vm5012_vm14, 1, %v4783_v9  ;;  %vm5014_vm3 = vnez %v5013_v51 }
 0x12d   : > { %vm855_vm8 = vcmp.eq.s32.totalorder %v743_v8, 1  ;;  %2427 = vmatmul.mubr.msk.f32.gmra.mrb[4].mxu1 %vm917_vm15, %v981_v47  ;;  %v740_v58 = vpop.permute.xlu0 %739  ;;  %1272 = vperm.xlu1 %2593, %v1129_v61   ;;  %v1132_v0 = vsel %vm5014_vm3, 1, %v4783_v9  ;;  %v994_v61 = vld [vmem:[%s2834_s8 + $0x190] sm:$0xff] }
 0x12e   : > { %vm919_vm0 = vmor %vm495_vm7, %vm855_vm8  ;;  %vm854_vm1 = vcmp.eq.s32.totalorder %v740_v58, 1  ;;  %1269 = vperm.xlu0 %2592, %v1128_v2   ;;  %v5031_v2 = vld [vmem:[#allocation41_spill] sm:$0xff]  ;;  %v5033_v58 = vld [vmem:[#allocation43_spill] sm:$0xff] }
 0x12f   : > { %vm918_vm12 = vmor %vm495_vm7, %vm854_vm1  ;;  %vm5016_vm1 = vnez %v5015_v57  ;;  %v5041_v57 = vld [vmem:[#allocation44_spill] sm:$0xff] }
 0x130   : > { %2429 = vmatprep.mubr.msk.f32.mxu1 %vm918_vm12, %v982_v35  ;;  %v749_v42 = vpop.permute.xlu1 %748  ;;  %v1135_v7 = vsel %vm5016_vm1, 1, %v4783_v9  ;;  %vm5018_vm12 = vnez %v5017_v39 }
 0x131   : > { %vm857_vm10 = vcmp.eq.s32.totalorder %v749_v42, 1  ;;  %2430 = vmatmul.mubr.msk.f32.gmra.mrb[6].mxu1 %vm919_vm0, %v983_v23  ;;  %v746_v48 = vpop.permute.xlu0 %745  ;;  %1278 = vperm.xlu1 %2593, %v1131_v45   ;;  %v1134_v60 = vsel %vm5018_vm12, 1, %v4783_v9  ;;  %v996_v45 = vld [vmem:[%s2834_s8 + $0x1a0] sm:$0xff] }
 0x132   : > { %vm921_vm2 = vmor %vm495_vm7, %vm857_vm10  ;;  %vm856_vm15 = vcmp.eq.s32.totalorder %v746_v48, 1  ;;  %1275 = vperm.xlu0 %2592, %v1130_v20  }
 0x133   : > { %vm920_vm13 = vmor %vm495_vm7, %vm856_vm15  ;;  %vm5020_vm15 = vnez %v5019_v13 }
 0x134   : > { %2432 = vmatprep.mubr.msk.f32.mxu1 %vm920_vm13, %v984_v44  ;;  %v755_v53 = vpop.permute.xlu1 %754  ;;  %v1137_v30 = vsel %vm5020_vm15, 1, %v4783_v9  ;;  %vm5022_vm13 = vnez %v5021_v54 }
 0x135   : > { %vm859_vm6 = vcmp.eq.s32.totalorder %v755_v53, 1  ;;  %2433 = vmatmul.mubr.msk.f32.gmra.mrb[8].mxu1 %vm921_vm2, %v985_v27  ;;  %v752_v62 = vpop.permute.xlu0 %751  ;;  %1284 = vperm.xlu1 %2593, %v1133_v41   ;;  %v1136_v6 = vsel %vm5022_vm13, 1, %v4783_v9  ;;  %v998_v27 = vld [vmem:[%s2834_s8 + $0x1b0] sm:$0xff] }
 0x136   : > { %vm923_vm8 = vmor %vm495_vm7, %vm859_vm6  ;;  %vm858_vm0 = vcmp.eq.s32.totalorder %v752_v62, 1  ;;  %1281 = vperm.xlu0 %2592, %v1132_v0   ;;  %v1000_v0 = vld [vmem:[%s2834_s8 + $0x1c0] sm:$0xff] }
 0x137   : > { %vm922_vm9 = vmor %vm495_vm7, %vm858_vm0  ;;  %vm5024_vm0 = vnez %v5023_v46 }
 0x138   : > { %2435 = vmatprep.mubr.msk.f32.mxu1 %vm922_vm9, %v986_v14  ;;  %v761_v4 = vpop.permute.xlu1 %760  ;;  %v1139_v15 = vsel %vm5024_vm0, 1, %v4783_v9  ;;  %vm5026_vm9 = vnez %v5025_v18 }
 0x139   : > { %vm861_vm11 = vcmp.eq.s32.totalorder %v761_v4, 1  ;;  %2436 = vmatmul.mubr.msk.f32.gmra.mrb[10].mxu1 %vm923_vm8, %v987_v21  ;;  %v758_v55 = vpop.permute.xlu0 %757  ;;  %1290 = vperm.xlu1 %2593, %v1135_v7   ;;  %v1138_v63 = vsel %vm5026_vm9, 1, %v4783_v9  ;;  %v1002_v21 = vld [vmem:[%s2834_s8 + $0x1d0] sm:$0xff]  ;;  %v1004_v4 = vld [vmem:[%s2834_s8 + $0x1e0] sm:$0xff] }
 0x13a   : > { %vm925_vm10 = vmor %vm495_vm7, %vm861_vm11  ;;  %vm860_vm2 = vcmp.eq.s32.totalorder %v758_v55, 1  ;;  %1287 = vperm.xlu0 %2592, %v1134_v60   ;;  %v1153_v55 = vsel %vm3636_vm5, 1, %v4783_v9 }
 0x13b   : > { %vm924_vm14 = vmor %vm495_vm7, %vm860_vm2  ;;  %vm5028_vm2 = vnez %v5027_v50 }
 0x13c   : > { %2438 = vmatprep.mubr.msk.f32.mxu1 %vm924_vm14, %v988_v36  ;;  %v767_v12 = vpop.permute.xlu1 %766  ;;  %v1141_v24 = vsel %vm5028_vm2, 1, %v4783_v9  ;;  %vm5030_vm14 = vnez %v5029_v32 }
 0x13d   : > { %vm863_vm3 = vcmp.eq.s32.totalorder %v767_v12, 1  ;;  %2439 = vmatmul.mubr.msk.f32.gmra.mrb[12].mxu1 %vm925_vm10, %v989_v11  ;;  %v764_v10 = vpop.permute.xlu0 %763  ;;  %1296 = vperm.xlu1 %2593, %v1137_v30   ;;  %v1140_v17 = vsel %vm5030_vm14, 1, %v4783_v9  ;;  %v1006_v30 = vld [vmem:[%s2834_s8 + $0x1f0] sm:$0xff] }
 0x13e   : > { %vm927_vm6 = vmor %vm495_vm7, %vm863_vm3  ;;  %vm862_vm8 = vcmp.eq.s32.totalorder %v764_v10, 1  ;;  %1293 = vperm.xlu0 %2592, %v1136_v6  }
 0x13f   : > { %vm926_vm1 = vmor %vm495_vm7, %vm862_vm8  ;;  %vm5032_vm8 = vnez %v5031_v2  ;;  %v4200_v2 = vld [vmem:[%s4554_s4] ss:$0 sm:$0xff] }
 0x140   : > { %2441 = vmatprep.mubr.msk.f32.mxu1 %vm926_vm1, %v990_v19  ;;  %v773_v16 = vpop.permute.xlu1 %772  ;;  %v1143_v8 = vsel %vm5032_vm8, 1, %v4783_v9  ;;  %vm5034_vm1 = vnez %v5033_v58 }
 0x141   : > { %vm865_vm12 = vcmp.eq.s32.totalorder %v773_v16, 1  ;;  %2442 = vmatmul.mubr.msk.f32.gmra.mrb[14].mxu1 %vm927_vm6, %v991_v33  ;;  %v770_v25 = vpop.permute.xlu0 %769  ;;  %1302 = vperm.xlu1 %2593, %v1139_v15   ;;  %v1142_v35 = vsel %vm5034_vm1, 1, %v4783_v9 }
 0x142   : > { %vm929_vm11 = vmor %vm495_vm7, %vm865_vm12  ;;  %vm864_vm10 = vcmp.eq.s32.totalorder %v770_v25, 1  ;;  %1299 = vperm.xlu0 %2592, %v1138_v63  }
 0x143   : > { %vm928_vm15 = vmor %vm495_vm7, %vm864_vm10  ;;  %vm5035_vm10 = vnez %v4877_v49  ;;  %v999_v49 = vld [vmem:[%s2834_s8 + $0x1b8] sm:$0xff] }
 0x144   : > { %2444 = vmatprep.mubr.msk.f32.mxu1 %vm928_vm15, %v992_v28  ;;  %v779_v47 = vpop.permute.xlu1 %778  ;;  %v1145_v20 = vsel %vm5035_vm10, 1, %v4783_v9  ;;  %vm5036_vm15 = vnez %v4883_v26 }
 0x145   : > { %vm867_vm13 = vcmp.eq.s32.totalorder %v779_v47, 1  ;;  %2445 = vmatmul.mubr.msk.f32.gmra.mrb[16].mxu1 %vm929_vm11, %v993_v22  ;;  %v776_v29 = vpop.permute.xlu0 %775  ;;  %1308 = vperm.xlu1 %2593, %v1141_v24   ;;  %v1144_v42 = vsel %vm5036_vm15, 1, %v4783_v9 }
 0x146   : > { %vm931_vm3 = vmor %vm495_vm7, %vm867_vm13  ;;  %vm866_vm6 = vcmp.eq.s32.totalorder %v776_v29, 1  ;;  %1305 = vperm.xlu0 %2592, %v1140_v17  }
 0x147   : > { %vm930_vm0 = vmor %vm495_vm7, %vm866_vm6  ;;  %vm5037_vm6 = vnez %v4889_v40  ;;  %v1001_v40 = vld [vmem:[%s2834_s8 + $0x1c8] sm:$0xff] }
 0x148   : > { %2447 = vmatprep.mubr.msk.f32.mxu1 %vm930_vm0, %v994_v61  ;;  %v785_v23 = vpop.permute.xlu1 %784  ;;  %v1147_v26 = vsel %vm5037_vm6, 1, %v4783_v9  ;;  %vm5038_vm0 = vnez %v4893_v38  ;;  %vm5042_vm6 = vnez %v5041_v57 }
 0x149   : > { %vm869_vm9 = vcmp.eq.s32.totalorder %v785_v23, 1  ;;  %2448 = vmatmul.mubr.msk.f32.gmra.mrb[18].mxu1 %vm931_vm3, %v995_v31  ;;  %v782_v37 = vpop.permute.xlu0 %781  ;;  %1314 = vperm.xlu1 %2593, %v1143_v8   ;;  %v1146_v52 = vsel %vm5038_vm0, 1, %v4783_v9  ;;  %v1150_v7 = vsel %vm5042_vm6, 1, %v4783_v9  ;;  %v4195_v31 = vld [vmem:[%s4553_s3] ss:$0 sm:$0xff] }
 0x14a   : > { %vm933_vm12 = vmor %vm495_vm7, %vm869_vm9  ;;  %vm868_vm11 = vcmp.eq.s32.totalorder %v782_v37, 1  ;;  %1311 = vperm.xlu0 %2592, %v1142_v35  }
 0x14b   : > { %vm932_vm2 = vmor %vm495_vm7, %vm868_vm11  ;;  %vm5039_vm11 = vnez %v4897_v43  ;;  %v1003_v43 = vld [vmem:[%s2834_s8 + $0x1d8] sm:$0xff] }
 0x14c   : > { %2450 = vmatprep.mubr.msk.f32.mxu1 %vm932_vm2, %v996_v45  ;;  %v791_v48 = vpop.permute.xlu1 %790  ;;  %v1149_v38 = vsel %vm5039_vm11, 1, %v4783_v9  ;;  %vm5040_vm2 = vnez %v4901_v56  ;;  %v1151_v56 = vsel %vm3611_vm4, 1, %v4783_v9 }
 0x14d   : > { %vm871_vm14 = vcmp.eq.s32.totalorder %v791_v48, 1  ;;  %2451 = vmatmul.mubr.msk.f32.gmra.mrb[20].mxu1 %vm933_vm12, %v997_v5  ;;  %v788_v44 = vpop.permute.xlu0 %787  ;;  %1320 = vperm.xlu1 %2593, %v1145_v20   ;;  %v1148_v53 = vsel %vm5040_vm2, 1, %v4783_v9 }
 0x14e   : > { %vm935_vm13 = vmor %vm495_vm7, %vm871_vm14  ;;  %vm870_vm3 = vcmp.eq.s32.totalorder %v788_v44, 1  ;;  %1317 = vperm.xlu0 %2592, %v1144_v42  }
 0x14f   : > { %vm934_vm8 = vmor %vm495_vm7, %vm870_vm3 }
 0x150   : > { %2453 = vmatprep.mubr.msk.f32.mxu1 %vm934_vm8, %v998_v27  ;;  %v797_v41 = vpop.permute.xlu1 %796 }
 0x151   : > { %vm873_vm1 = vcmp.eq.s32.totalorder %v797_v41, 1  ;;  %2454 = vmatmul.mubr.msk.f32.gmra.mrb[22].mxu1 %vm935_vm13, %v999_v49  ;;  %v794_v51 = vpop.permute.xlu0 %793  ;;  %1326 = vperm.xlu1 %2593, %v1147_v26  }
 0x152   : > { %vm937_vm9 = vmor %vm495_vm7, %vm873_vm1  ;;  %vm872_vm12 = vcmp.eq.s32.totalorder %v794_v51, 1  ;;  %1323 = vperm.xlu0 %2592, %v1146_v52  }
 0x153   : > { %vm936_vm10 = vmor %vm495_vm7, %vm872_vm12 }
 0x154   : > { %2456 = vmatprep.mubr.msk.f32.mxu1 %vm936_vm10, %v1000_v0  ;;  %v803_v62 = vpop.permute.xlu1 %802 }
 0x155   : > { %vm875_vm15 = vcmp.eq.s32.totalorder %v803_v62, 1  ;;  %2457 = vmatmul.mubr.msk.f32.gmra.mrb[24].mxu1 %vm937_vm9, %v1001_v40  ;;  %v800_v14 = vpop.permute.xlu0 %799  ;;  %1332 = vperm.xlu1 %2593, %v1149_v38   ;;  %vm5043_vm9 = vnez %v4918_v59 }
 0x156   : > { %vm939_vm14 = vmor %vm495_vm7, %vm875_vm15  ;;  %vm874_vm13 = vcmp.eq.s32.totalorder %v800_v14, 1  ;;  %1329 = vperm.xlu0 %2592, %v1148_v53   ;;  %v1152_v36 = vsel %vm5043_vm9, 1, %v4783_v9 }
 0x157   : > { %vm938_vm3 = vmor %vm495_vm7, %vm874_vm13 }
 0x158   : > { %2459 = vmatprep.mubr.msk.f32.mxu1 %vm938_vm3, %v1002_v21  ;;  %v809_v39 = vpop.permute.xlu1 %808 }
 0x159   : > { %vm877_vm8 = vcmp.eq.s32.totalorder %v809_v39, 1  ;;  %2460 = vmatmul.mubr.msk.f32.gmra.mrb[26].mxu1 %vm939_vm14, %v1003_v43  ;;  %v806_v60 = vpop.permute.xlu0 %805  ;;  %1338 = vperm.xlu1 %2593, %v1151_v56  }
 0x15a   : > { %vm941_vm0 = vmor %vm495_vm7, %vm877_vm8  ;;  %vm876_vm1 = vcmp.eq.s32.totalorder %v806_v60, 1  ;;  %1335 = vperm.xlu0 %2592, %v1150_v7  }
 0x15b   : > { %vm940_vm4 = vmor %vm495_vm7, %vm876_vm1 }
 0x15c   : > { %2462 = vmatprep.mubr.msk.f32.mxu1 %vm940_vm4, %v1004_v4  ;;  %v815_v11 = vpop.permute.xlu1 %814 }
 0x15d   : > { %vm879_vm12 = vcmp.eq.s32.totalorder %v815_v11, 1  ;;  %2463 = vmatmul.mubr.msk.f32.gmra.mrb[28].mxu1 %vm941_vm0, %v1005_v34  ;;  %v812_v13 = vpop.permute.xlu0 %811  ;;  %1344 = vperm.xlu1 %2593, %v1153_v55  }
 0x15e   : > { %vm943_vm11 = vmor %vm495_vm7, %vm879_vm12  ;;  %vm878_vm10 = vcmp.eq.s32.totalorder %v812_v13, 1  ;;  %1341 = vperm.xlu0 %2592, %v1152_v36  }
 0x15f   : > { %vm942_vm5 = vmor %vm495_vm7, %vm878_vm10 }
 0x160   : > { %2465 = vmatprep.mubr.msk.f32.mxu1 %vm942_vm5, %v1006_v30  ;;  %v1159_v59 = vpop.permute.xlu1 %1158 }
 0x161   : > { %2466 = vmatmul.mubr.msk.f32.gmra.mrb[30].mxu1 %vm943_vm11, %v1007_v3  ;;  %v1156_v9 = vpop.permute.xlu0 %1155  ;;  %vm1347_vm7 = vcmp.eq.s32.totalorder %v1159_v59, 1 }
 0x162   : > { %vm1346_vm2 = vcmp.eq.s32.totalorder %v1156_v9, 1  ;;  %v1423_v58 = vsel %vm1347_vm7, %v4195_v31, %v4200_v2 }
 0x163   : > { %v1422_v37 = vsel %vm1346_vm2, %v4195_v31, %v4200_v2 }
 0x164   : > { %v1165_v54 = vpop.permute.xlu1 %1164 }
 0x165   : > { %v1162_v6 = vpop.permute.xlu0 %1161  ;;  %vm1349_vm15 = vcmp.eq.s32.totalorder %v1165_v54, 1 }
 0x166   : > { %vm1348_vm14 = vcmp.eq.s32.totalorder %v1162_v6, 1  ;;  %v1425_v42 = vsel %vm1349_vm15, %v4195_v31, %v4200_v2 }
 0x167   : > { %v1424_v27 = vsel %vm1348_vm14, %v4195_v31, %v4200_v2 }
 0x168   : > { %v1171_v12 = vpop.permute.xlu1 %1170 }
 0x169   : > { %v1168_v10 = vpop.permute.xlu0 %1167  ;;  %vm1351_vm13 = vcmp.eq.s32.totalorder %v1171_v12, 1 }
 0x16a   : > { %vm1350_vm3 = vcmp.eq.s32.totalorder %v1168_v10, 1  ;;  %v1427_v51 = vsel %vm1351_vm13, %v4195_v31, %v4200_v2 }
 0x16b   : > { %v1426_v38 = vsel %vm1350_vm3, %v4195_v31, %v4200_v2 }
 0x16c   : > { %v1177_v19 = vpop.permute.xlu1 %1176 }
 0x16d   : > { %v4158_v33 = vpop.permute.xlu0 %1173  ;;  %vm1353_vm6 = vcmp.eq.s32.totalorder %v1177_v19, 1 }
 0x16e   : > { %vm1352_vm8 = vcmp.eq.s32.totalorder %v4158_v33, 1  ;;  %v1429_v21 = vsel %vm1353_vm6, %v4195_v31, %v4200_v2 }
 0x16f   : > { %v1428_v57 = vsel %vm1352_vm8, %v4195_v31, %v4200_v2 }
 0x170   : > { %v4160_v46 = vpop.permute.xlu1 %1182 }
 0x171   : > { %v4162_v15 = vpop.permute.xlu0 %1179  ;;  %vm1355_vm0 = vcmp.eq.s32.totalorder %v4160_v46, 1 }
 0x172   : > { %vm1354_vm1 = vcmp.eq.s32.totalorder %v4162_v15, 1  ;;  %v1431_v4 = vsel %vm1355_vm0, %v4195_v31, %v4200_v2 }
 0x173   : > { %v1430_v36 = vsel %vm1354_vm1, %v4195_v31, %v4200_v2 }
 0x174   : > { %v4164_v18 = vpop.permute.xlu1 %1188 }
 0x175   : > { %v4166_v63 = vpop.permute.xlu0 %1185  ;;  %vm1357_vm4 = vcmp.eq.s32.totalorder %v4164_v18, 1 }
 0x176   : > { %vm1356_vm9 = vcmp.eq.s32.totalorder %v4166_v63, 1  ;;  %v1433_v59 = vsel %vm1357_vm4, %v4195_v31, %v4200_v2 }
 0x177   : > { %v1432_v6 = vsel %vm1356_vm9, %v4195_v31, %v4200_v2 }
 0x178   : > { %v4168_v1 = vpop.permute.xlu1 %1194 }
 0x179   : > { %v4170_v16 = vpop.permute.xlu0 %1191  ;;  %vm1359_vm12 = vcmp.eq.s32.totalorder %v4168_v1, 1 }
 0x17a   : > { %vm1358_vm11 = vcmp.eq.s32.totalorder %v4170_v16, 1  ;;  %v1435_v33 = vsel %vm1359_vm12, %v4195_v31, %v4200_v2 }
 0x17b   : > { %v1434_v18 = vsel %vm1358_vm11, %v4195_v31, %v4200_v2 }
 0x17c   : > { %v4172_v25 = vpop.permute.xlu1 %1200 }
 0x17d   : > { %v4174_v28 = vpop.permute.xlu0 %1197  ;;  %vm1361_vm10 = vcmp.eq.s32.totalorder %v4172_v25, 1 }
 0x17e   : > { %vm1360_vm5 = vcmp.eq.s32.totalorder %v4174_v28, 1 }
 0x180   : > { %v4176_v22 = vpop.permute.xlu1 %1206 }
 0x181   : > { %v4178_v50 = vpop.permute.xlu0 %1203  ;;  %vm1363_vm7 = vcmp.eq.s32.totalorder %v4176_v22, 1 }
 0x182   : > { %vm1362_vm2 = vcmp.eq.s32.totalorder %v4178_v50, 1 }
 0x184   : > { %v4180_v24 = vpop.permute.xlu1 %1212 }
 0x185   : > { %v4182_v32 = vpop.permute.xlu0 %1209  ;;  %vm1365_vm15 = vcmp.eq.s32.totalorder %v4180_v24, 1 }
 0x186   : > { %vm1364_vm14 = vcmp.eq.s32.totalorder %v4182_v32, 1 }
 0x188   : > { %v4184_v17 = vpop.permute.xlu1 %1218 }
 0x189   : > { %v4186_v47 = vpop.permute.xlu0 %1215  ;;  %vm1367_vm13 = vcmp.eq.s32.totalorder %v4184_v17, 1 }
 0x18a   : > { %vm1366_vm3 = vcmp.eq.s32.totalorder %v4186_v47, 1 }
 0x18c   : > { %v4188_v29 = vpop.permute.xlu1 %1224 }
 0x18d   : > { %v4190_v61 = vpop.permute.xlu0 %1221  ;;  %vm1369_vm6 = vcmp.eq.s32.totalorder %v4188_v29, 1 }
 0x18e   : > { %vm1368_vm8 = vcmp.eq.s32.totalorder %v4190_v61, 1 }
 0x190   : > { %v4202_v8 = vpop.permute.xlu1 %1230 }
 0x191   : > { %v4208_v5 = vpop.permute.xlu0 %1227  ;;  %vm1371_vm0 = vcmp.eq.s32.totalorder %v4202_v8, 1 }
 0x192   : > { %vm1370_vm1 = vcmp.eq.s32.totalorder %v4208_v5, 1 }
 0x194   : > { %v4220_v26 = vpop.permute.xlu1 %1236 }
 0x195   : > { %v4223_v41 = vpop.permute.xlu0 %1233  ;;  %vm1373_vm4 = vcmp.eq.s32.totalorder %v4220_v26, 1 }
 0x196   : > { %vm1372_vm9 = vcmp.eq.s32.totalorder %v4223_v41, 1 }
 0x198   : > { %v4232_v14 = vpop.permute.xlu1 %1242 }
 0x199   : > { %v4241_v39 = vpop.permute.xlu0 %1239  ;;  %vm1375_vm12 = vcmp.eq.s32.totalorder %v4232_v14, 1 }
 0x19a   : > { %vm1374_vm11 = vcmp.eq.s32.totalorder %v4241_v39, 1 }
 0x19c   : > { %v4251_v13 = vpop.permute.xlu1 %1248 }
 0x19d   : > { %v4254_v3 = vpop.permute.xlu0 %1245 }
 0x1a0   : > { %v4264_v19 = vpop.permute.xlu1 %1254 }
 0x1a1   : > { %v4273_v1 = vpop.permute.xlu0 %1251 }
 0x1a4   : > { %v4283_v28 = vpop.permute.xlu1 %1260 }
 0x1af   : > { %v2374_v35 = vpop.f32.mrb[0].mxu0 }
 0x1b0   : > { %v1558_v23 = vadd.f32 %v2374_v35, %v1423_v58  ;;  %v1552_v45 = vpop.f32.mrb[1].mxu0  ;;  %v1437_v58 = vsel %vm1361_vm10, %v4195_v31, %v4200_v2  ;;  %vm1377_vm10 = vcmp.eq.s32.totalorder %v4251_v13, 1 }
 0x1b1   : > { %v1553_v20 = vadd.f32 %v1552_v45, %v1422_v37  ;;  %v1453_v13 = vsel %vm1377_vm10, %v4195_v31, %v4200_v2 }
 0x1b2   : > { %1872 = vst [vmem:[%s4212_s13 + $0x8] sm:$0xff] %v1558_v23  ;;  %v1436_v23 = vsel %vm1360_vm5, %v4195_v31, %v4200_v2  ;;  %vm1376_vm5 = vcmp.eq.s32.totalorder %v4254_v3, 1 }
 0x1b3   : > { %1871 = vst [vmem:[%s4212_s13] sm:$0xff] %v1553_v20  ;;  %v2377_v48 = vpop.f32.mrb[2].mxu0  ;;  %v4286_v20 = vpop.permute.xlu0 %1257  ;;  %v1452_v3 = vsel %vm1376_vm5, %v4195_v31, %v4200_v2 }
 0x1b4   : > { %v1568_v44 = vadd.f32 %v2377_v48, %v1425_v42  ;;  %v1562_v49 = vpop.f32.mrb[3].mxu0  ;;  %v1439_v42 = vsel %vm1363_vm7, %v4195_v31, %v4200_v2  ;;  %vm1379_vm7 = vcmp.eq.s32.totalorder %v4264_v19, 1 }
 0x1b5   : > { %v1563_v52 = vadd.f32 %v1562_v49, %v1424_v27  ;;  %v4296_v49 = vpop.permute.xlu1 %1266 }
 0x1b6   : > { %1874 = vst [vmem:[%s4212_s13 + $0x18] sm:$0xff] %v1568_v44  ;;  %v1438_v44 = vsel %vm1362_vm2, %v4195_v31, %v4200_v2  ;;  %vm1378_vm2 = vcmp.eq.s32.totalorder %v4273_v1, 1  ;;  %v1455_v1 = vsel %vm1379_vm7, %v4195_v31, %v4200_v2 }
 0x1b7   : > { %1873 = vst [vmem:[%s4212_s13 + $0x10] sm:$0xff] %v1563_v52  ;;  %v2380_v0 = vpop.f32.mrb[4].mxu0  ;;  %v1441_v52 = vsel %vm1365_vm15, %v4195_v31, %v4200_v2  ;;  %v4305_v32 = vpop.permute.xlu0 %1263  ;;  %vm1381_vm15 = vcmp.eq.s32.totalorder %v4283_v28, 1 }
 0x1b8   : > { %v1578_v40 = vadd.f32 %v2380_v0, %v1427_v51  ;;  %v1572_v53 = vpop.f32.mrb[5].mxu0  ;;  %v1440_v0 = vsel %vm1364_vm14, %v4195_v31, %v4200_v2  ;;  %vm1380_vm14 = vcmp.eq.s32.totalorder %v4286_v20, 1  ;;  %v1457_v28 = vsel %vm1381_vm15, %v4195_v31, %v4200_v2 }
 0x1b9   : > { %v1573_v62 = vadd.f32 %v1572_v53, %v1426_v38  ;;  %v1443_v53 = vsel %vm1367_vm13, %v4195_v31, %v4200_v2  ;;  %v4315_v47 = vpop.permute.xlu1 %1272  ;;  %vm1383_vm13 = vcmp.eq.s32.totalorder %v4296_v49, 1 }
 0x1ba   : > { %1876 = vst [vmem:[%s4212_s13 + $0x28] sm:$0xff] %v1578_v40 }
 0x1bb   : > { %1875 = vst [vmem:[%s4212_s13 + $0x20] sm:$0xff] %v1573_v62  ;;  %v2383_v43 = vpop.f32.mrb[6].mxu0 }
 0x1bc   : > { %v1588_v56 = vadd.f32 %v2383_v43, %v1429_v21  ;;  %v1582_v7 = vpop.f32.mrb[7].mxu0  ;;  %v1442_v21 = vsel %vm1366_vm3, %v4195_v31, %v4200_v2  ;;  %vm1382_vm3 = vcmp.eq.s32.totalorder %v4305_v32, 1 }
 0x1bd   : > { %v1583_v60 = vadd.f32 %v1582_v7, %v1428_v57  ;;  %v4318_v57 = vpop.permute.xlu0 %1269  ;;  %v1445_v7 = vsel %vm1369_vm6, %v4195_v31, %v4200_v2  ;;  %vm1385_vm6 = vcmp.eq.s32.totalorder %v4315_v47, 1 }
 0x1be   : > { %1878 = vst [vmem:[%s4212_s13 + $0x38] sm:$0xff] %v1588_v56 }
 0x1bf   : > { %1877 = vst [vmem:[%s4212_s13 + $0x30] sm:$0xff] %v1583_v60  ;;  %v2386_v34 = vpop.f32.mrb[8].mxu0 }
 0x1c0   : > { %v1598_v55 = vadd.f32 %v2386_v34, %v1431_v4  ;;  %v1592_v11 = vpop.f32.mrb[9].mxu0  ;;  %v1444_v4 = vsel %vm1368_vm8, %v4195_v31, %v4200_v2  ;;  %vm1384_vm8 = vcmp.eq.s32.totalorder %v4318_v57, 1 }
 0x1c1   : > { %v1593_v30 = vadd.f32 %v1592_v11, %v1430_v36  ;;  %v1447_v36 = vsel %vm1371_vm0, %v4195_v31, %v4200_v2  ;;  %v4337_v5 = vpop.permute.xlu0 %1275 }
 0x1c2   : > { %1880 = vst [vmem:[%s4212_s13 + $0x48] sm:$0xff] %v1598_v55  ;;  %v4328_v55 = vpop.permute.xlu1 %1278 }
 0x1c3   : > { %1879 = vst [vmem:[%s4212_s13 + $0x40] sm:$0xff] %v1593_v30  ;;  %v2389_v9 = vpop.f32.mrb[10].mxu0  ;;  %v1446_v30 = vsel %vm1370_vm1, %v4195_v31, %v4200_v2  ;;  %vm1387_vm0 = vcmp.eq.s32.totalorder %v4328_v55, 1  ;;  %vm1386_vm1 = vcmp.eq.s32.totalorder %v4337_v5, 1 }
 0x1c4   : > { %v1608_v54 = vadd.f32 %v2389_v9, %v1433_v59  ;;  %v1602_v12 = vpop.f32.mrb[11].mxu0 }
 0x1c5   : > { %v1603_v10 = vadd.f32 %v1602_v12, %v1432_v6  ;;  %v1448_v12 = vsel %vm1372_vm9, %v4195_v31, %v4200_v2 }
 0x1c6   : > { %1882 = vst [vmem:[%s4212_s13 + $0x58] sm:$0xff] %v1608_v54  ;;  %v1449_v54 = vsel %vm1373_vm4, %v4195_v31, %v4200_v2  ;;  %v4347_v41 = vpop.permute.xlu1 %1284 }
 0x1c7   : > { %1881 = vst [vmem:[%s4212_s13 + $0x50] sm:$0xff] %v1603_v10  ;;  %v2392_v46 = vpop.f32.mrb[12].mxu0  ;;  %vm1389_vm4 = vcmp.eq.s32.totalorder %v4347_v41, 1 }
 0x1c8   : > { %v1618_v15 = vadd.f32 %v2392_v46, %v1435_v33  ;;  %v1612_v63 = vpop.f32.mrb[13].mxu0  ;;  %v4350_v46 = vpop.permute.xlu0 %1281 }
 0x1c9   : > { %v1613_v16 = vadd.f32 %v1612_v63, %v1434_v18  ;;  %v1450_v63 = vsel %vm1374_vm11, %v4195_v31, %v4200_v2  ;;  %vm1388_vm9 = vcmp.eq.s32.totalorder %v4350_v46, 1 }
 0x1ca   : > { %1884 = vst [vmem:[%s4212_s13 + $0x68] sm:$0xff] %v1618_v15  ;;  %v1451_v15 = vsel %vm1375_vm12, %v4195_v31, %v4200_v2 }
 0x1cb   : > { %1883 = vst [vmem:[%s4212_s13 + $0x60] sm:$0xff] %v1613_v16  ;;  %v2395_v35 = vpop.f32.mrb[14].mxu0 }
 0x1cc   : > { %v1628_v25 = vadd.f32 %v2395_v35, %v1437_v58  ;;  %v1622_v37 = vpop.f32.mrb[15].mxu0  ;;  %v4362_v58 = vpop.permute.xlu1 %1290 }
 0x1cd   : > { %v1623_v45 = vadd.f32 %v1622_v37, %v1436_v23  ;;  %v4372_v37 = vpop.permute.xlu0 %1287  ;;  %vm1391_vm12 = vcmp.eq.s32.totalorder %v4362_v58, 1 }
 0x1ce   : > { %1886 = vst [vmem:[%s4212_s13 + $0x78] sm:$0xff] %v1628_v25  ;;  %vm1390_vm11 = vcmp.eq.s32.totalorder %v4372_v37, 1 }
 0x1cf   : > { %1885 = vst [vmem:[%s4212_s13 + $0x70] sm:$0xff] %v1623_v45  ;;  %v2398_v22 = vpop.f32.mrb[16].mxu0  ;;  %v1466_v46 = vsel %vm1390_vm11, %v4195_v31, %v4200_v2 }
 0x1d0   : > { %v1638_v48 = vadd.f32 %v2398_v22, %v1439_v42  ;;  %v1632_v50 = vpop.f32.mrb[17].mxu0  ;;  %v1454_v22 = vsel %vm1378_vm2, %v4195_v31, %v4200_v2  ;;  %v4387_v20 = vpop.permute.xlu1 %1296 }
 0x1d1   : > { %v1633_v27 = vadd.f32 %v1632_v50, %v1438_v44  ;;  %vm1393_vm10 = vcmp.eq.s32.totalorder %v4387_v20, 1 }
 0x1d2   : > { %1888 = vst [vmem:[%s4212_s13 + $0x88] sm:$0xff] %v1638_v48 }
 0x1d3   : > { %1887 = vst [vmem:[%s4212_s13 + $0x80] sm:$0xff] %v1633_v27  ;;  %v2401_v51 = vpop.f32.mrb[18].mxu0 }
 0x1d4   : > { %v1648_v24 = vadd.f32 %v2401_v51, %v1441_v52  ;;  %v1642_v40 = vpop.f32.mrb[19].mxu0  ;;  %v1456_v52 = vsel %vm1380_vm14, %v4195_v31, %v4200_v2 }
 0x1d5   : > { %v1643_v38 = vadd.f32 %v1642_v40, %v1440_v0  ;;  %v4389_v0 = vpop.permute.xlu0 %1293  ;;  %v1459_v40 = vsel %vm1383_vm13, %v4195_v31, %v4200_v2 }
 0x1d6   : > { %1890 = vst [vmem:[%s4212_s13 + $0x98] sm:$0xff] %v1648_v24  ;;  %vm1392_vm5 = vcmp.eq.s32.totalorder %v4389_v0, 1 }
 0x1d7   : > { %1889 = vst [vmem:[%s4212_s13 + $0x90] sm:$0xff] %v1643_v38  ;;  %v2404_v62 = vpop.f32.mrb[20].mxu0 }
 0x1d8   : > { %v1658_v17 = vadd.f32 %v2404_v62, %v1443_v53  ;;  %v1652_v43 = vpop.f32.mrb[21].mxu0  ;;  %v1458_v53 = vsel %vm1382_vm3, %v4195_v31, %v4200_v2 }
 0x1d9   : > { %v1653_v56 = vadd.f32 %v1652_v43, %v1442_v21  ;;  %v1461_v21 = vsel %vm1385_vm6, %v4195_v31, %v4200_v2  ;;  %v1300_v47 = vpop.permute.xlu0 %1299 }
 0x1da   : > { %1892 = vst [vmem:[%s4212_s13 + $0xa8] sm:$0xff] %v1658_v17  ;;  %v1303_v17 = vpop.permute.xlu1 %1302  ;;  %vm1394_vm2 = vcmp.eq.s32.totalorder %v1300_v47, 1 }
 0x1db   : > { %1891 = vst [vmem:[%s4212_s13 + $0xa0] sm:$0xff] %v1653_v56  ;;  %v2407_v29 = vpop.f32.mrb[22].mxu0  ;;  %vm1395_vm7 = vcmp.eq.s32.totalorder %v1303_v17, 1 }
 0x1dc   : > { %v1668_v60 = vadd.f32 %v2407_v29, %v1445_v7  ;;  %v1662_v61 = vpop.f32.mrb[23].mxu0  ;;  %v1460_v7 = vsel %vm1384_vm8, %v4195_v31, %v4200_v2 }
 0x1dd   : > { %v1663_v34 = vadd.f32 %v1662_v61, %v1444_v4 }
 0x1de   : > { %1894 = vst [vmem:[%s4212_s13 + $0xb8] sm:$0xff] %v1668_v60  ;;  %v1463_v60 = vsel %vm1387_vm0, %v4195_v31, %v4200_v2 }
 0x1df   : > { %1893 = vst [vmem:[%s4212_s13 + $0xb0] sm:$0xff] %v1663_v34  ;;  %v1462_v34 = vsel %vm1386_vm1, %v4195_v31, %v4200_v2 }
 0x1e2   : > { %v2410_v11 = vpop.f32.mrb[24].mxu0 }
 0x1e3   : > { %v1678_v8 = vadd.f32 %v2410_v11, %v1447_v36  ;;  %v1672_v59 = vpop.f32.mrb[25].mxu0  ;;  %v1309_v36 = vpop.permute.xlu1 %1308 }
 0x1e4   : > { %v1673_v9 = vadd.f32 %v1672_v59, %v1446_v30  ;;  %v1465_v30 = vsel %vm1389_vm4, %v4195_v31, %v4200_v2  ;;  %vm1397_vm15 = vcmp.eq.s32.totalorder %v1309_v36, 1 }
 0x1e5   : > { %1896 = vst [vmem:[%s4212_s13 + $0xc8] sm:$0xff] %v1678_v8  ;;  %v1306_v8 = vpop.permute.xlu0 %1305 }
 0x1e6   : > { %1895 = vst [vmem:[%s4212_s13 + $0xc0] sm:$0xff] %v1673_v9  ;;  %v1464_v9 = vsel %vm1388_vm9, %v4195_v31, %v4200_v2  ;;  %vm1396_vm14 = vcmp.eq.s32.totalorder %v1306_v8, 1 }
 0x1e9   : > { %v1312_v41 = vpop.permute.xlu0 %1311 }
 0x1ea   : > { %vm1398_vm3 = vcmp.eq.s32.totalorder %v1312_v41, 1 }
 0x1eb   : > { %v2413_v6 = vpop.f32.mrb[26].mxu0  ;;  %v1474_v0 = vsel %vm1398_vm3, %v4195_v31, %v4200_v2 }
 0x1ec   : > { %v1688_v26 = vadd.f32 %v2413_v6, %v1449_v54  ;;  %v1682_v10 = vpop.f32.mrb[27].mxu0 }
 0x1ed   : > { %v1683_v33 = vadd.f32 %v1682_v10, %v1448_v12  ;;  %v1467_v12 = vsel %vm1391_vm12, %v4195_v31, %v4200_v2 }
 0x1ee   : > { %1898 = vst [vmem:[%s4212_s13 + $0xd8] sm:$0xff] %v1688_v26  ;;  %v1315_v26 = vpop.permute.xlu1 %1314 }
 0x1ef   : > { %1897 = vst [vmem:[%s4212_s13 + $0xd0] sm:$0xff] %v1683_v33  ;;  %vm1399_vm13 = vcmp.eq.s32.totalorder %v1315_v26, 1 }
 0x1f0   : > { %v2416_v14 = vpop.f32.mrb[28].mxu0 }
 0x1f1   : > { %v1698_v18 = vadd.f32 %v2416_v14, %v1451_v15  ;;  %v1692_v39 = vpop.f32.mrb[29].mxu0 }
 0x1f2   : > { %v1693_v16 = vadd.f32 %v1692_v39, %v1450_v63 }
 0x1f3   : > { %1900 = vst [vmem:[%s4212_s13 + $0xe8] sm:$0xff] %v1698_v18  ;;  %v1469_v18 = vsel %vm1393_vm10, %v4195_v31, %v4200_v2 }
 0x1f4   : > { %1899 = vst [vmem:[%s4212_s13 + $0xe0] sm:$0xff] %v1693_v16  ;;  %v2419_v35 = vpop.f32.mrb[30].mxu0  ;;  %v1468_v16 = vsel %vm1392_vm5, %v4195_v31, %v4200_v2 }
 0x1f5   : > { %v1708_v25 = vadd.f32 %v2419_v35, %v1453_v13  ;;  %v1702_v19 = vpop.f32.mrb[31].mxu0  ;;  %v1321_v13 = vpop.permute.xlu1 %1320 }
 0x1f6   : > { %v1703_v45 = vadd.f32 %v1702_v19, %v1452_v3  ;;  %v1471_v3 = vsel %vm1395_vm7, %v4195_v31, %v4200_v2  ;;  %vm1401_vm6 = vcmp.eq.s32.totalorder %v1321_v13, 1 }
 0x1f7   : > { %1902 = vst [vmem:[%s4212_s13 + $0xf8] sm:$0xff] %v1708_v25  ;;  %v1318_v25 = vpop.permute.xlu0 %1317 }
 0x1f8   : > { %v2422_v23 = vpop.f32.mrb[0].mxu1  ;;  %1901 = vst [vmem:[%s4212_s13 + $0xf0] sm:$0xff] %v1703_v45  ;;  %vm1400_vm8 = vcmp.eq.s32.totalorder %v1318_v25, 1 }
 0x1f9   : > { %v1718_v42 = vadd.f32 %v2422_v23, %v1455_v1  ;;  %v1712_v48 = vpop.f32.mrb[1].mxu1  ;;  %v1470_v23 = vsel %vm1394_vm2, %v4195_v31, %v4200_v2 }
 0x1fa   : > { %v1713_v44 = vadd.f32 %v1712_v48, %v1454_v22  ;;  %v1473_v22 = vsel %vm1397_vm15, %v4195_v31, %v4200_v2 }
 0x1fb   : > { %1904 = vst [vmem:[%s4212_s13 + $0x108] sm:$0xff] %v1718_v42  ;;  %v1327_v42 = vpop.permute.xlu1 %1326 }
 0x1fc   : > { %1903 = vst [vmem:[%s4212_s13 + $0x100] sm:$0xff] %v1713_v44  ;;  %v2425_v50 = vpop.f32.mrb[2].mxu1  ;;  %v1324_v44 = vpop.permute.xlu0 %1323  ;;  %vm1403_vm0 = vcmp.eq.s32.totalorder %v1327_v42, 1 }
 0x1fd   : > { %v1728_v27 = vadd.f32 %v2425_v50, %v1457_v28  ;;  %v1722_v51 = vpop.f32.mrb[3].mxu1  ;;  %v1472_v50 = vsel %vm1396_vm14, %v4195_v31, %v4200_v2  ;;  %vm1402_vm1 = vcmp.eq.s32.totalorder %v1324_v44, 1 }
 0x1fe   : > { %v1723_v24 = vadd.f32 %v1722_v51, %v1456_v52  ;;  %v1475_v51 = vsel %vm1399_vm13, %v4195_v31, %v4200_v2 }
 0x1ff   : > { %1906 = vst [vmem:[%s4212_s13 + $0x118] sm:$0xff] %v1728_v27 }
 0x200   : > { %1905 = vst [vmem:[%s4212_s13 + $0x110] sm:$0xff] %v1723_v24  ;;  %v2428_v49 = vpop.f32.mrb[4].mxu1 }
 0x201   : > { %v1738_v38 = vadd.f32 %v2428_v49, %v1459_v40  ;;  %v1732_v32 = vpop.f32.mrb[5].mxu1  ;;  %v1333_v49 = vpop.permute.xlu1 %1332 }
 0x202   : > { %v1733_v62 = vadd.f32 %v1732_v32, %v1458_v53  ;;  %v1330_v53 = vpop.permute.xlu0 %1329  ;;  %v1477_v32 = vsel %vm1401_vm6, %v4195_v31, %v4200_v2  ;;  %vm1405_vm4 = vcmp.eq.s32.totalorder %v1333_v49, 1 }
 0x203   : > { %1908 = vst [vmem:[%s4212_s13 + $0x128] sm:$0xff] %v1738_v38  ;;  %vm1404_vm9 = vcmp.eq.s32.totalorder %v1330_v53, 1 }
 0x204   : > { %1907 = vst [vmem:[%s4212_s13 + $0x120] sm:$0xff] %v1733_v62  ;;  %v2431_v43 = vpop.f32.mrb[6].mxu1  ;;  %v1480_v8 = vsel %vm1404_vm9, %v4195_v31, %v4200_v2 }
 0x205   : > { %v1748_v56 = vadd.f32 %v2431_v43, %v1461_v21  ;;  %v1742_v29 = vpop.f32.mrb[7].mxu1  ;;  %v1476_v21 = vsel %vm1400_vm8, %v4195_v31, %v4200_v2 }
 0x206   : > { %v1743_v57 = vadd.f32 %v1742_v29, %v1460_v7  ;;  %v1479_v7 = vsel %vm1403_vm0, %v4195_v31, %v4200_v2 }
 0x207   : > { %1910 = vst [vmem:[%s4212_s13 + $0x138] sm:$0xff] %v1748_v56  ;;  %v1339_v56 = vpop.permute.xlu1 %1338 }
 0x208   : > { %1909 = vst [vmem:[%s4212_s13 + $0x130] sm:$0xff] %v1743_v57  ;;  %v2434_v4 = vpop.f32.mrb[8].mxu1  ;;  %v1336_v57 = vpop.permute.xlu0 %1335  ;;  %vm1407_vm12 = vcmp.eq.s32.totalorder %v1339_v56, 1 }
 0x209   : > { %v1758_v61 = vadd.f32 %v2434_v4, %v1463_v60  ;;  %v1752_v55 = vpop.f32.mrb[9].mxu1  ;;  %v1478_v4 = vsel %vm1402_vm1, %v4195_v31, %v4200_v2  ;;  %vm1406_vm11 = vcmp.eq.s32.totalorder %v1336_v57, 1 }
 0x20a   : > { %v1753_v11 = vadd.f32 %v1752_v55, %v1462_v34  ;;  %v1481_v55 = vsel %vm1405_vm4, %v4195_v31, %v4200_v2 }
 0x20b   : > { %1912 = vst [vmem:[%s4212_s13 + $0x148] sm:$0xff] %v1758_v61 }
 0x20c   : > { %1911 = vst [vmem:[%s4212_s13 + $0x140] sm:$0xff] %v1753_v11  ;;  %v2437_v59 = vpop.f32.mrb[10].mxu1 }
 0x20d   : > { %v1768_v5 = vadd.f32 %v2437_v59, %v1465_v30  ;;  %v1762_v54 = vpop.f32.mrb[11].mxu1  ;;  %v1345_v59 = vpop.permute.xlu1 %1344 }
 0x20e   : > { %v1763_v6 = vadd.f32 %v1762_v54, %v1464_v9  ;;  %v1342_v9 = vpop.permute.xlu0 %1341  ;;  %v1483_v54 = vsel %vm1407_vm12, %v4195_v31, %v4200_v2  ;;  %vm1409_vm10 = vcmp.eq.s32.totalorder %v1345_v59, 1 }
 0x20f   : > { %1914 = vst [vmem:[%s4212_s13 + $0x158] sm:$0xff] %v1768_v5  ;;  %vm1408_vm5 = vcmp.eq.s32.totalorder %v1342_v9, 1 }
 0x210   : > { %1913 = vst [vmem:[%s4212_s13 + $0x150] sm:$0xff] %v1763_v6  ;;  %v2440_v10 = vpop.f32.mrb[12].mxu1 }
 0x211   : > { %v1778_v33 = vadd.f32 %v2440_v10, %v1467_v12  ;;  %v1772_v15 = vpop.f32.mrb[13].mxu1  ;;  %v1482_v12 = vsel %vm1406_vm11, %v4195_v31, %v4200_v2 }
 0x212   : > { %v1773_v14 = vadd.f32 %v1772_v15, %v1466_v46 }
 0x213   : > { %1916 = vst [vmem:[%s4212_s13 + $0x168] sm:$0xff] %v1778_v33  ;;  %v1485_v33 = vsel %vm1409_vm10, %v4195_v31, %v4200_v2 }
 0x214   : > { %1915 = vst [vmem:[%s4212_s13 + $0x160] sm:$0xff] %v1773_v14  ;;  %v2443_v63 = vpop.f32.mrb[14].mxu1  ;;  %v1484_v14 = vsel %vm1408_vm5, %v4195_v31, %v4200_v2 }
 0x215   : > { %v1788_v39 = vadd.f32 %v2443_v63, %v1469_v18  ;;  %v1782_v58 = vpop.f32.mrb[15].mxu1 }
 0x216   : > { %v1783_v35 = vadd.f32 %v1782_v58, %v1468_v16 }
 0x217   : > { %1918 = vst [vmem:[%s4212_s13 + $0x178] sm:$0xff] %v1788_v39 }
 0x218   : > { %1917 = vst [vmem:[%s4212_s13 + $0x170] sm:$0xff] %v1783_v35  ;;  %v2446_v19 = vpop.f32.mrb[16].mxu1 }
 0x219   : > { %v1798_v1 = vadd.f32 %v2446_v19, %v1471_v3  ;;  %v1792_v37 = vpop.f32.mrb[17].mxu1 }
 0x21a   : > { %v1793_v45 = vadd.f32 %v1792_v37, %v1470_v23 }
 0x21b   : > { %1920 = vst [vmem:[%s4212_s13 + $0x188] sm:$0xff] %v1798_v1 }
 0x21c   : > { %1919 = vst [vmem:[%s4212_s13 + $0x180] sm:$0xff] %v1793_v45  ;;  %v2449_v48 = vpop.f32.mrb[18].mxu1 }
 0x21d   : > { %v1808_v28 = vadd.f32 %v2449_v48, %v1473_v22  ;;  %v1802_v27 = vpop.f32.mrb[19].mxu1 }
 0x21e   : > { %v1803_v52 = vadd.f32 %v1802_v27, %v1472_v50 }
 0x21f   : > { %1922 = vst [vmem:[%s4212_s13 + $0x198] sm:$0xff] %v1808_v28 }
 0x220   : > { %1921 = vst [vmem:[%s4212_s13 + $0x190] sm:$0xff] %v1803_v52  ;;  %v2452_v20 = vpop.f32.mrb[20].mxu1 }
 0x221   : > { %v1818_v24 = vadd.f32 %v2452_v20, %v1475_v51  ;;  %v1812_v40 = vpop.f32.mrb[21].mxu1 }
 0x222   : > { %v1813_v38 = vadd.f32 %v1812_v40, %v1474_v0 }
 0x223   : > { %1924 = vst [vmem:[%s4212_s13 + $0x1a8] sm:$0xff] %v1818_v24 }
 0x224   : > { %1923 = vst [vmem:[%s4212_s13 + $0x1a0] sm:$0xff] %v1813_v38  ;;  %v2455_v62 = vpop.f32.mrb[22].mxu1 }
 0x225   : > { %v1828_v17 = vadd.f32 %v2455_v62, %v1477_v32  ;;  %v1822_v43 = vpop.f32.mrb[23].mxu1 }
 0x226   : > { %v1823_v47 = vadd.f32 %v1822_v43, %v1476_v21 }
 0x227   : > { %1926 = vst [vmem:[%s4212_s13 + $0x1b8] sm:$0xff] %v1828_v17 }
 0x228   : > { %1925 = vst [vmem:[%s4212_s13 + $0x1b0] sm:$0xff] %v1823_v47  ;;  %v2458_v29 = vpop.f32.mrb[24].mxu1 }
 0x229   : > { %v1838_v60 = vadd.f32 %v2458_v29, %v1479_v7  ;;  %v1832_v61 = vpop.f32.mrb[25].mxu1 }
 0x22a   : > { %v1833_v34 = vadd.f32 %v1832_v61, %v1478_v4 }
 0x22b   : > { %1928 = vst [vmem:[%s4212_s13 + $0x1c8] sm:$0xff] %v1838_v60 }
 0x22c   : > { %1927 = vst [vmem:[%s4212_s13 + $0x1c0] sm:$0xff] %v1833_v34  ;;  %v2461_v36 = vpop.f32.mrb[26].mxu1 }
 0x22d   : > { %v1848_v11 = vadd.f32 %v2461_v36, %v1481_v55  ;;  %v1842_v30 = vpop.f32.mrb[27].mxu1 }
 0x22e   : > { %v1843_v5 = vadd.f32 %v1842_v30, %v1480_v8 }
 0x22f   : > { %1930 = vst [vmem:[%s4212_s13 + $0x1d8] sm:$0xff] %v1848_v11 }
 0x230   : > { %1929 = vst [vmem:[%s4212_s13 + $0x1d0] sm:$0xff] %v1843_v5  ;;  %v2464_v6 = vpop.f32.mrb[28].mxu1 }
 0x231   : > { %v1858_v26 = vadd.f32 %v2464_v6, %v1483_v54  ;;  %v1852_v10 = vpop.f32.mrb[29].mxu1 }
 0x232   : > { %v1853_v41 = vadd.f32 %v1852_v10, %v1482_v12  ;;  %1942 = sbr.rel (!%p2772_p9) target bundleno = 597 (0x255), region = 48 }
 0x233   : > { %1932 = vst [vmem:[%s4212_s13 + $0x1e8] sm:$0xff] %v1858_v26 }
 0x234   : > { %1931 = vst [vmem:[%s4212_s13 + $0x1e0] sm:$0xff] %v1853_v41  ;;  %v2467_v46 = vpop.f32.mrb[30].mxu1 }
 0x235   : > { %v1868_v15 = vadd.f32 %v2467_v46, %v1485_v33  ;;  %v1862_v18 = vpop.f32.mrb[31].mxu1 }
 0x236   : > { %v1863_v63 = vadd.f32 %v1862_v18, %v1484_v14 }
 0x237   : > { %1934 = vst [vmem:[%s4212_s13 + $0x1f8] sm:$0xff] %v1868_v15 }
 0x238   : > { %1933 = vst [vmem:[%s4212_s13 + $0x1f0] sm:$0xff] %v1863_v63 }
 0x239   : > { %s5053_s14 = smov (!%p1945_p6, %s1944_s14), 64 }
 0x23a   : > { %s4491_s15 = sshll.u32 %s5053_s14, 7 }
 0x23b   : > { %s1949_s16 = ssub.s32 8192, %s4491_s15 }
 0x23c   : > { %1950 = vsyncadd %s1936_s6, %s1949_s16  ;;  %p2124_p11 = scmp.ne.s32.totalorder %s4491_s15, 0  ;;  %s2131_s25 = sshll.u32 %s2749_s22, 13 }
 0x23d   : > { %s4501_s12 = scalar_lea.hbm %s4555_s5, %s2131_s25  ;;  %s1955_s10 = sshll.u32 %s4212_s13, 4  ;;  %s4504_s10 = int_to_ptr.vmem [resolvable:$true] %s1955_s10 }
 0x23e   : > { %s2622_s17 = scalar_lea.vmem %s4504_s10, %s4491_s15  ;;  %s2695_s23 = smov [#allocation5]  }
 0x23f   : > { %p2623_p9 = scmp.ne.s32.totalorder %s4504_s10, %s2622_s17  ;;  %s2626_s8 = sshll.u32 %s2695_s23, 4  ;;  %s2627_s8 = int_to_ptr.vmem [resolvable:$false] %s2626_s8 }
 0x240   : > { %s2628_s22 = scalar_lea.vmem %s2627_s8, 16384  ;;  %p2629_p0 = scmp.lt.s32.totalorder %s4504_s10, %s2627_s8 }
 0x241   : > { %p2624_p13 = pnand %p2623_p9, %p2124_p11  ;;  %p2630_p1 = scmp.lt.s32.totalorder %s2628_s22, %s2622_s17 }
 0x243   : > { %p2625_p12 = pneg %p2624_p13  ;;  %p2631_p3 = por %p2630_p1, %p2629_p0 }
 0x245   : > { %p2632_p4 = pnand %p2631_p3, %p2625_p12 }
 0x247   : > { %2635 = shalt.err (!%p2632_p4)
}
 0x248   : > { %s2636_s11 = scalar_lea.hbm %s4501_s12, %s4491_s15  ;;  %s2640_s13 = scalar_lea.hbm %s4555_s5, 16000 }
 0x249   : > { %p2637_p5 = scmp.ne.s32.totalorder %s4501_s12, %s2636_s11  ;;  %p2641_p8 = scmp.lt.u32.totalorder %s4501_s12, %s4555_s5 }
 0x24a   : > { %p2642_p10 = scmp.lt.u32.totalorder %s2640_s13, %s2636_s11  ;;  %p2644_p9 = scmp.lt.u32.totalorder %s2636_s11, %s4501_s12 }
 0x24b   : > { %p2638_p2 = pnand %p2637_p5, %p2124_p11 }
 0x24c   : > { %p2643_p6 = por %p2642_p10, %p2641_p8 }
 0x24d   : > { %p2639_p7 = pneg %p2638_p2 }
 0x24e   : > { %p2645_p13 = por %p2644_p9, %p2643_p6 }
 0x250   : > { %p2646_p12 = pnand %p2645_p13, %p2639_p7 }
 0x252   : > { %2649 = shalt.err (!%p2646_p12)
}
 0x253   : > { %s2696_s25 = smov 128   ;;  %s2697_s29 = smov 8  }
 0x254   : > { %1961 = dma.vmem_to_hbm [thread:$0]  (%p2124_p11), %s4504_s10, %s4491_s15, %s4501_s12, %s1936_s6, %s2696_s25, %s2696_s25, %s2697_s29  }
 0x255 PF: > { %s1970_s7 = sand.u32 1, %s2676_s18   ;;  %p5044_p0 = scmp.ne.s32.totalorder %s4660_s30, 0 }
 0x256   : > { %p5045_p1 = scmp.ge.s32.totalorder %s2688_s21, 2  ;;  %s1971_s17 = scalar_lea.sflag [#allocation4], %s1970_s7 }
 0x258   : > { %p2550_p3 = pnand %p5045_p1, %p5044_p0 }
 0x25a   : > { %2671 = dma.done.wait (!%p2550_p3), %s1971_s17, 8192  }
 0x25b   : > { %2673 = vsyncadd (!%p2550_p3), %s1971_s17, 4294959104  ;;  %p18_p4 = scmp.ge.s32.totalorder %s2753_s24, 4   ;;  %s5046_s18 = smov %s2680_s19 }
 0x25c   : > { %s5047_s19 = smov %s2684_s20  ;;  %s5048_s20 = smov %s2765_s27 }
 0x25d   : > { %s5049_s21 = smov %s2753_s24  ;;  %20 = sbr.rel (!%p18_p4) target bundleno = 5 (0x5), region = 88 }
 0x264   :  { %1976 = vsyncpa [#allocation3], 1 }
 0x265   :  { %1978 = vsyncpa [#allocation3 + $0x1], 1 }
 0x266   :  { %1979 = vsyncpa [#allocation4], 1 }
 0x267   :  { %1981 = vsyncpa [#allocation4 + $0x1], 1 }

</bundles_post_ra>
